<compile_context>
chip_gen: v5e
topology: v5e:2x2
jax: 0.10.0
libtpu: 0.0.40
codegen_flags: <defaults>
</compile_context>

<pallas_src>
import functools

import numpy as np
import jax
import jax.numpy as jnp
from jax.experimental import pallas as pl
from jax.experimental.pallas import tpu as pltpu

# ---- module hyper-parameters -------------------------------------------------
SAMPLE_RATE = 4096
FRAME_SIZE = 16
BASE_FREQUENCY = 440.0
BETA = 0.78
KERNEL_SIZE = int(4.6 * SAMPLE_RATE / BASE_FREQUENCY)   # 42 taps
PAD_SIZE = KERNEL_SIZE - 1


def _round_up(x, m):
    return ((x + m - 1) // m) * m


# ----------------------------- Pallas kernel ----------------------------------
def _make_kernel(bn, lb, nlb, l_orig):
    """Per (batch-tile, time-block) kernel body; works in 128-sample chunks."""
    nc = lb // 128            # output chunks per block
    nce = nc + 1              # +1 look-ahead chunk for the K-1 conv taps
    # chunks that can ever reach past the true signal end (static per chunk):
    need_mask = [(nlb - 1) * lb + c * 128 + 127 >= l_orig for c in range(nce)]

    def kernel(f0b_ref, uvb_ref, sawlast_ref, wlin_ref, wnn_ref, tri_ref,
               banda_ref, bandb_ref, noise_ref, out_ref, carry_ref):
        l = pl.program_id(1)

        @pl.when(l == 0)
        def _():
            carry_ref[...] = jnp.zeros_like(carry_ref)

        f0b = f0b_ref[...]                       # (bn, FRB)  bf16
        uvb = uvb_ref[...]                       # (bn, FRB)  bf16
        tri = tri_ref[...]                       # (128,128)  f32
        banda = banda_ref[...]                   # (128,128)  bf16
        bandb = bandb_ref[...]                   # (128,128)  bf16
        block_start = l * lb

        offset = carry_ref[...]                  # (bn, 1) f32 running phase (frac)
        prev_imp = None

        for c in range(nce):                     # static unroll; one chunk live
            lo = c * 128
            # (1) linear-interp upsample of -f0/sr for this chunk (bf16 MXU).
            x_c = jnp.dot(f0b, wlin_ref[:, lo:lo + 128],
                          preferred_element_type=jnp.float32)       # (bn,128)
            # (2) phase: in-chunk prefix sum on the MXU + running offset (f32).
            rad = jnp.dot(x_c, tri, preferred_element_type=jnp.float32) + offset
            # (3) sawtooth + impulse; saw[t-1] == frac(rad[t] - x[t]).
            saw = rad - jnp.floor(rad)
            rad_p = rad - x_c
            imp = saw - (rad_p - jnp.floor(rad_p))

            if c == 0 or need_mask[c]:
                lane = jax.lax.broadcasted_iota(jnp.int32, (bn, 128), 1)
            if c == 0:
                # circular wrap of sawtooth.roll(1) at the very first sample.
                imp = jnp.where((lane == 0) & (l == 0),
                                saw - sawlast_ref[...], imp)
            if need_mask[c]:
                # reference right-zero-pads the impulse before the conv.
                imp = jnp.where(lane + (block_start + lo) < l_orig, imp, 0.0)
            imp = imp.astype(jnp.bfloat16)

            # running offset / cross-block carry (frac only matters downstream).
            offset = offset + jnp.sum(x_c, axis=1, keepdims=True)
            if c == nc - 1:
                carry_ref[...] = offset - jnp.floor(offset)

            # (4)+(5) banded conv (two bf16 MXU matmuls) + voiced/noise blend.
            if c >= 1:
                oc = lo - 128
                cyc = (jnp.dot(prev_imp, banda, preferred_element_type=jnp.float32)
                       + jnp.dot(imp, bandb, preferred_element_type=jnp.float32))
                vm = jnp.dot(uvb, wnn_ref[:, oc:oc + 128],
                             preferred_element_type=jnp.float32)
                out_ref[:, oc:oc + 128] = (
                    cyc * vm + (1.0 - vm) * noise_ref[:, oc:oc + 128])
            prev_imp = imp

    return kernel


# ------------------- static (shift-invariant) matrices -------------------------
@functools.lru_cache(maxsize=None)
def _static_matrices(frb, lb_ext, lb):
    F, SR = FRAME_SIZE, SAMPLE_RATE
    # linear-interp upsample weights, pre-scaled by -1/SR (bf16-exact values).
    wlin = np.zeros((frb, lb_ext), np.float32)
    q = np.arange(lb_ext)
    s_rel = (q + 0.5) / F - 0.5
    r0 = np.floor(s_rel).astype(np.int64) + 1          # +1: duplicated front frame
    w = (s_rel - np.floor(s_rel)).astype(np.float32)
    np.add.at(wlin, (r0, q), -(1.0 - w) / SR)
    np.add.at(wlin, (r0 + 1, q), -w / SR)
    # nearest-neighbour one-hots for the voiced mask.
    wnn = np.zeros((frb, lb), np.float32)
    t = np.arange(lb)
    wnn[t // F + 1, t] = 1.0
    # 128x128 upper-triangular ones -> inclusive prefix sum via one MXU pass.
    tri = np.triu(np.ones((128, 128), np.float32))
    return (jnp.asarray(wlin).astype(jnp.bfloat16),
            jnp.asarray(wnn).astype(jnp.bfloat16),
            jnp.asarray(tri))


def _band_matrices(filt_np):
    # cyc_chunk = imp_cur @ BAND_A + imp_next @ BAND_B,
    # with B256[p, t] = filt[p - t] for 0 <= p - t < K (K - 1 <= 128).
    k = filt_np.shape[0]
    p = np.arange(256)[:, None]
    t = np.arange(128)[None, :]
    d = p - t
    b256 = np.where((d >= 0) & (d < k),
                    filt_np[np.clip(d, 0, k - 1)], 0.0).astype(np.float32)
    return (jnp.asarray(b256[:128]).astype(jnp.bfloat16),
            jnp.asarray(b256[128:]).astype(jnp.bfloat16))


# ------------------------------- wrapper ---------------------------------------
def cyclic_noise_oscillator(f0, uv, noise, filt, *, block_l=1024, block_n=None):
    """f0, uv: (N,1,Lf) float32; noise: (N,1,Lf*FRAME_SIZE); filt: (K,)."""
    F, SR = FRAME_SIZE, SAMPLE_RATE
    K = int(filt.shape[0])
    N, _, Lf = f0.shape
    L = Lf * F

    if block_n is None:
        # Fill the MXU M dimension (v6e/v7x: 128; use block_n=64 on v5e).  On
        # v7x with N <= 128 you may prefer block_n = round_up(N,16)//2 so the
        # parallel batch axis still spans both TensorCores.
        block_n = min(128, _round_up(N, 8))
    BN = block_n
    LB = min(block_l, _round_up(L, 128))       # output samples per time block
    assert LB % 128 == 0 and K - 1 <= 128
    LB_EXT = LB + 128                          # covers the K-1 conv look-ahead
    FB = LB // F                               # frames consumed per block
    FRB = _round_up(LB_EXT // F + 2, 8)        # frames read per block (w/ halo)

    L_eff = _round_up(L, LB)
    nlb = L_eff // LB
    NP = _round_up(N, BN)
    nt = NP // BN
    f32, bf16 = jnp.float32, jnp.bfloat16

    f0s = jnp.zeros((NP, Lf), f32).at[:N].set(f0[:, 0, :].astype(f32))
    uvs = jnp.zeros((NP, Lf), f32).at[:N].set(uv[:, 0, :].astype(f32))
    nz = jnp.zeros((NP, L_eff), f32).at[:N, :L].set(noise[:, 0, :].astype(f32))

    # frame-rate arrays, front-padded with a duplicated frame (left clamp of
    # F.interpolate) and tail-padded with the last frame (right clamp + halo).
    LFP = 1 + (nlb - 1) * FB + FRB

    def pad_frames(x):
        tail = jnp.repeat(x[:, -1:], LFP - 1 - Lf, axis=1)
        return jnp.concatenate([x[:, :1], x, tail], axis=1)

    f0p = pad_frames(f0s)
    uvp = pad_frames(uvs)

    bidx = np.arange(nlb)[:, None] * FB + np.arange(FRB)[None, :]   # (nlb, FRB)
    f0_bl = f0p[:, bidx].transpose(1, 0, 2).astype(bf16)            # (nlb, NP, FRB)
    uv_bl = uvp[:, bidx].transpose(1, 0, 2).astype(bf16)

    # sawtooth at the very last sample of the sequence (circular roll term):
    # sum(linearly upsampled f0) == FRAME_SIZE * sum(frame f0).
    tot = -(float(F) / SR) * jnp.sum(f0s, axis=1, keepdims=True)
    sawlast = tot - jnp.floor(tot)                                   # (NP, 1)

    wlin, wnn, tri = _static_matrices(FRB, LB_EXT, LB)
    # band matrices are tiny and built host-side (requires a concrete filter).
    banda, bandb = _band_matrices(np.asarray(jax.device_get(filt), np.float32))

    kernel = _make_kernel(BN, LB, nlb, L)

    out = pl.pallas_call(
        kernel,
        out_shape=jax.ShapeDtypeStruct((NP, L_eff), f32),
        grid=(nt, nlb),
        in_specs=[
            pl.BlockSpec((None, BN, FRB), lambda n, l: (l, n, 0)),       # f0 frames
            pl.BlockSpec((None, BN, FRB), lambda n, l: (l, n, 0)),       # uv frames
            pl.BlockSpec((BN, 1), lambda n, l: (n, 0)),                  # sawlast
            pl.BlockSpec((FRB, LB_EXT), lambda n, l: (0, 0)),            # WLIN
            pl.BlockSpec((FRB, LB), lambda n, l: (0, 0)),                # WNN
            pl.BlockSpec((128, 128), lambda n, l: (0, 0)),               # TRI
            pl.BlockSpec((128, 128), lambda n, l: (0, 0)),               # BAND_A
            pl.BlockSpec((128, 128), lambda n, l: (0, 0)),               # BAND_B
            pl.BlockSpec((BN, LB), lambda n, l: (n, l)),                 # noise
        ],
        out_specs=pl.BlockSpec((BN, LB), lambda n, l: (n, l)),
        scratch_shapes=[pltpu.VMEM((BN, 1), jnp.float32)],               # phase carry
        compiler_params=pltpu.CompilerParams(
            dimension_semantics=("parallel", "arbitrary")),
    )(f0_bl, uv_bl, sawlast, wlin, wnn, tri, banda, bandb, nz)

    return out[:N, :L][:, None, :]


# -------------------- deterministic "generate_kernel" --------------------------
def generate_filter(key):
    # TODO(synk): torch.randn_like RNG stream cannot be replicated bit-wise;
    # the noise*decay kernel is generated deterministically with jax.random.
    t = jnp.arange(KERNEL_SIZE, dtype=jnp.float32)
    decay = jnp.exp(-t * BASE_FREQUENCY / BETA / SAMPLE_RATE)
    return jax.random.normal(key, (KERNEL_SIZE,), dtype=jnp.float32) * decay


# ---------------------- pure-JAX reference (semantics) -------------------------
def reference_forward(f0, uv, noise, filt):
    N, _, Lf = f0.shape
    F_ = FRAME_SIZE
    L = Lf * F_
    K = int(filt.shape[0])
    j = jnp.arange(L)
    s = jnp.maximum((j + 0.5) / F_ - 0.5, 0.0)
    i0 = jnp.floor(s).astype(jnp.int32)
    i1 = jnp.minimum(i0 + 1, Lf - 1)
    w = (s - i0).astype(jnp.float32)
    f0s = f0[:, 0, :]
    f0_up = f0s[:, i0] * (1.0 - w) + f0s[:, i1] * w
    vmask = uv[:, 0, :][:, j // F_]
    rad = jnp.cumsum(-f0_up / SAMPLE_RATE, axis=1)
    saw = jnp.mod(rad, 1.0)
    impulse = saw - jnp.roll(saw, 1, axis=1)
    imp_pad = jnp.pad(impulse, ((0, 0), (0, K - 1)))
    cyc = jnp.zeros((N, L), jnp.float32)
    for k in range(K):
        cyc = cyc + filt[k] * imp_pad[:, k:k + L]
    src = cyc * vmask + (1.0 - vmask) * noise[:, 0, :]
    return src[:, None, :]


# ----------------------------------- main ---------------------------------------
if __name__ == "__main__":
    key = jax.random.PRNGKey(0)
    k1, k2, k3, k4 = jax.random.split(key, 4)

    N, Lf = 16, 96                       # batch, number of frames
    L = Lf * FRAME_SIZE                  # upsampled length = 1536 -> 2 time blocks
    # f0 values are multiples of 512 Hz and the conv taps are rounded to the
    # bf16 grid, so every intermediate (including the bf16 matmul operands) is
    # exactly representable -> the comparison below is noise-free.
    f0 = (512.0 * jax.random.randint(k1, (N, 1, Lf), 1, 4)).astype(jnp.float32)
    uv = (jax.random.uniform(k2, (N, 1, Lf)) > 0.4).astype(jnp.float32)
    noise = jax.random.normal(k3, (N, 1, L), dtype=jnp.float32)
    filt = generate_filter(k4)
    filt = filt.astype(jnp.bfloat16).astype(jnp.float32)

    out = cyclic_noise_oscillator(f0, uv, noise, filt)
    out = jax.block_until_ready(out)

    ref = reference_forward(f0, uv, noise, filt)
    assert out.shape == (N, 1, L), out.shape
    np.testing.assert_allclose(np.asarray(out), np.asarray(ref),
                               rtol=1e-4, atol=1e-4)
    print("KERNEL_OK")
</pallas_src>

<mosaic_0001>
module attributes {stable_mosaic.version = 11 : i64} {
  func.func @kernel(%arg0: i32, %arg1: i32, %arg2: memref<1x16x80xbf16, #tpu.memory_space<vmem>>, %arg3: memref<1x16x80xbf16, #tpu.memory_space<vmem>>, %arg4: memref<16x1xf32, #tpu.memory_space<vmem>>, %arg5: memref<80x1152xbf16, #tpu.memory_space<vmem>>, %arg6: memref<80x1024xbf16, #tpu.memory_space<vmem>>, %arg7: memref<128x128xf32, #tpu.memory_space<vmem>>, %arg8: memref<128x128xbf16, #tpu.memory_space<vmem>>, %arg9: memref<128x128xbf16, #tpu.memory_space<vmem>>, %arg10: memref<16x1024xf32, #tpu.memory_space<vmem>>, %arg11: memref<16x1024xf32, #tpu.memory_space<vmem>>, %arg12: memref<16x1xf32, #tpu.memory_space<vmem>>) attributes {dimension_semantics = [#tpu.dimension_semantics<parallel>, #tpu.dimension_semantics<arbitrary>], iteration_bounds = array<i64: 1, 2>, scalar_prefetch = 0 : i64, scratch_operands = 1 : i64, tpu.core_type = #tpu.core_type<tc>, window_params = [{transform_indices = @transform_0, window_bounds = array<i64: 1, 16, 80>}, {transform_indices = @transform_1, window_bounds = array<i64: 1, 16, 80>}, {transform_indices = @transform_2, window_bounds = array<i64: 16, 1>}, {pipeline_mode = #tpu.pipeline_mode<synchronous>, transform_indices = @transform_3, window_bounds = array<i64: 80, 1152>}, {pipeline_mode = #tpu.pipeline_mode<synchronous>, transform_indices = @transform_4, window_bounds = array<i64: 80, 1024>}, {pipeline_mode = #tpu.pipeline_mode<synchronous>, transform_indices = @transform_5, window_bounds = array<i64: 128, 128>}, {pipeline_mode = #tpu.pipeline_mode<synchronous>, transform_indices = @transform_6, window_bounds = array<i64: 128, 128>}, {pipeline_mode = #tpu.pipeline_mode<synchronous>, transform_indices = @transform_7, window_bounds = array<i64: 128, 128>}, {transform_indices = @transform_8, window_bounds = array<i64: 16, 1024>}, {transform_indices = @transform_9, window_bounds = array<i64: 16, 1024>}]} {
    %c0_i32 = arith.constant 0 : i32
    %0 = arith.cmpi eq, %arg1, %c0_i32 : i32
    %1 = arith.extui %0 : i1 to i32
    %c0_i32_0 = arith.constant 0 : i32
    %2 = arith.cmpi ne, %1, %c0_i32_0 : i32
    scf.if %2 {
      %cst_145 = arith.constant 0.000000e+00 : f32
      %293 = vector.broadcast %cst_145 : f32 to vector<16x1xf32>
      %c0_146 = arith.constant 0 : index
      %c0_147 = arith.constant 0 : index
      %294 = vector.load %arg12[%c0_146, %c0_147] : memref<16x1xf32, #tpu.memory_space<vmem>>, vector<16x1xf32>
      tpu.vector_store %arg12[%c0_146, %c0_147], %293 {strides = array<i32>} : memref<16x1xf32, #tpu.memory_space<vmem>>, vector<16x1xf32>,
    } else {
    }
    %c0 = arith.constant 0 : index
    %c0_1 = arith.constant 0 : index
    %c0_2 = arith.constant 0 : index
    %3 = vector.load %arg2[%c0, %c0_1, %c0_2] : memref<1x16x80xbf16, #tpu.memory_space<vmem>>, vector<1x16x80xbf16>
    %4 = vector.shape_cast %3 : vector<1x16x80xbf16> to vector<16x80xbf16>
    %c0_3 = arith.constant 0 : index
    %c0_4 = arith.constant 0 : index
    %c0_5 = arith.constant 0 : index
    %5 = vector.load %arg3[%c0_3, %c0_4, %c0_5] : memref<1x16x80xbf16, #tpu.memory_space<vmem>>, vector<1x16x80xbf16>
    %6 = vector.shape_cast %5 : vector<1x16x80xbf16> to vector<16x80xbf16>
    %c0_6 = arith.constant 0 : index
    %c0_7 = arith.constant 0 : index
    %7 = vector.load %arg7[%c0_6, %c0_7] : memref<128x128xf32, #tpu.memory_space<vmem>>, vector<128x128xf32>
    %c0_8 = arith.constant 0 : index
    %c0_9 = arith.constant 0 : index
    %8 = vector.load %arg8[%c0_8, %c0_9] : memref<128x128xbf16, #tpu.memory_space<vmem>>, vector<128x128xbf16>
    %c0_10 = arith.constant 0 : index
    %c0_11 = arith.constant 0 : index
    %9 = vector.load %arg9[%c0_10, %c0_11] : memref<128x128xbf16, #tpu.memory_space<vmem>>, vector<128x128xbf16>
    %c1024_i32 = arith.constant 1024 : i32
    %10 = arith.muli %arg1, %c1024_i32 : i32
    %c0_12 = arith.constant 0 : index
    %c0_13 = arith.constant 0 : index
    %11 = vector.load %arg12[%c0_12, %c0_13] : memref<16x1xf32, #tpu.memory_space<vmem>>, vector<16x1xf32>
    %c0_14 = arith.constant 0 : index
    %c0_15 = arith.constant 0 : index
    %12 = vector.load %arg5[%c0_14, %c0_15] : memref<80x1152xbf16, #tpu.memory_space<vmem>>, vector<80x128xbf16>
    %cst = arith.constant dense<0.000000e+00> : vector<16x128xf32>
    %13 = tpu.matmul %4, %12, %cst {dimension_numbers = #tpu.dot_dimension_numbers<[1], [0], [0], [1], [0, 0, 1, 1], [], []>} : vector<16x80xbf16>, vector<80x128xbf16>, vector<16x128xf32> -> vector<16x128xf32>
    %cst_16 = arith.constant dense<0.000000e+00> : vector<16x128xf32>
    %14 = tpu.matmul %13, %7, %cst_16 {dimension_numbers = #tpu.dot_dimension_numbers<[1], [0], [0], [1], [0, 0, 1, 1], [], []>} : vector<16x128xf32>, vector<128x128xf32>, vector<16x128xf32> -> vector<16x128xf32>
    %15 = vector.broadcast %11 : vector<16x1xf32> to vector<16x128xf32>
    %16 = arith.addf %14, %15 : vector<16x128xf32>
    %17 = math.floor %16 : vector<16x128xf32>
    %18 = arith.subf %16, %17 : vector<16x128xf32>
    %19 = arith.subf %16, %13 : vector<16x128xf32>
    %20 = math.floor %19 : vector<16x128xf32>
    %21 = arith.subf %19, %20 : vector<16x128xf32>
    %22 = arith.subf %18, %21 : vector<16x128xf32>
    %23 = tpu.iota {dimensions = array<i32: 1>} : vector<16x128xi32>
    %c0_i32_17 = arith.constant 0 : i32
    %24 = vector.broadcast %c0_i32_17 : i32 to vector<16x128xi32>
    %25 = arith.cmpi eq, %23, %24 : vector<16x128xi32>
    %c0_i32_18 = arith.constant 0 : i32
    %26 = arith.cmpi eq, %arg1, %c0_i32_18 : i32
    %27 = vector.broadcast %26 : i1 to vector<16x128xi1>
    %28 = arith.andi %25, %27 : vector<16x128xi1>
    %c0_19 = arith.constant 0 : index
    %c0_20 = arith.constant 0 : index
    %29 = vector.load %arg4[%c0_19, %c0_20] : memref<16x1xf32, #tpu.memory_space<vmem>>, vector<16x1xf32>
    %30 = vector.broadcast %29 : vector<16x1xf32> to vector<16x128xf32>
    %31 = arith.subf %18, %30 : vector<16x128xf32>
    %32 = arith.select %28, %31, %22 : vector<16x128xi1>, vector<16x128xf32>
    %33 = arith.truncf %32 : vector<16x128xf32> to vector<16x128xbf16>
    %cst_21 = arith.constant dense<0.000000e+00> : vector<16xf32>
    %34 = vector.multi_reduction <add>, %13, %cst_21 [1] : vector<16x128xf32> to vector<16xf32>
    %35 = vector.shape_cast %34 : vector<16xf32> to vector<16x1xf32>
    %36 = arith.addf %11, %35 : vector<16x1xf32>
    %c0_22 = arith.constant 0 : index
    %c128 = arith.constant 128 : index
    %37 = vector.load %arg5[%c0_22, %c128] : memref<80x1152xbf16, #tpu.memory_space<vmem>>, vector<80x128xbf16>
    %cst_23 = arith.constant dense<0.000000e+00> : vector<16x128xf32>
    %38 = tpu.matmul %4, %37, %cst_23 {dimension_numbers = #tpu.dot_dimension_numbers<[1], [0], [0], [1], [0, 0, 1, 1], [], []>} : vector<16x80xbf16>, vector<80x128xbf16>, vector<16x128xf32> -> vector<16x128xf32>
    %cst_24 = arith.constant dense<0.000000e+00> : vector<16x128xf32>
    %39 = tpu.matmul %38, %7, %cst_24 {dimension_numbers = #tpu.dot_dimension_numbers<[1], [0], [0], [1], [0, 0, 1, 1], [], []>} : vector<16x128xf32>, vector<128x128xf32>, vector<16x128xf32> -> vector<16x128xf32>
    %40 = vector.broadcast %36 : vector<16x1xf32> to vector<16x128xf32>
    %41 = arith.addf %39, %40 : vector<16x128xf32>
    %42 = math.floor %41 : vector<16x128xf32>
    %43 = arith.subf %41, %42 : vector<16x128xf32>
    %44 = arith.subf %41, %38 : vector<16x128xf32>
    %45 = math.floor %44 : vector<16x128xf32>
    %46 = arith.subf %44, %45 : vector<16x128xf32>
    %47 = arith.subf %43, %46 : vector<16x128xf32>
    %48 = arith.truncf %47 : vector<16x128xf32> to vector<16x128xbf16>
    %cst_25 = arith.constant dense<0.000000e+00> : vector<16xf32>
    %49 = vector.multi_reduction <add>, %38, %cst_25 [1] : vector<16x128xf32> to vector<16xf32>
    %50 = vector.shape_cast %49 : vector<16xf32> to vector<16x1xf32>
    %51 = arith.addf %36, %50 : vector<16x1xf32>
    %cst_26 = arith.constant dense<0.000000e+00> : vector<16x128xf32>
    %52 = tpu.matmul %33, %8, %cst_26 {dimension_numbers = #tpu.dot_dimension_numbers<[1], [0], [0], [1], [0, 0, 1, 1], [], []>} : vector<16x128xbf16>, vector<128x128xbf16>, vector<16x128xf32> -> vector<16x128xf32>
    %cst_27 = arith.constant dense<0.000000e+00> : vector<16x128xf32>
    %53 = tpu.matmul %48, %9, %cst_27 {dimension_numbers = #tpu.dot_dimension_numbers<[1], [0], [0], [1], [0, 0, 1, 1], [], []>} : vector<16x128xbf16>, vector<128x128xbf16>, vector<16x128xf32> -> vector<16x128xf32>
    %54 = arith.addf %52, %53 : vector<16x128xf32>
    %c0_28 = arith.constant 0 : index
    %c0_29 = arith.constant 0 : index
    %55 = vector.load %arg6[%c0_28, %c0_29] : memref<80x1024xbf16, #tpu.memory_space<vmem>>, vector<80x128xbf16>
    %cst_30 = arith.constant dense<0.000000e+00> : vector<16x128xf32>
    %56 = tpu.matmul %6, %55, %cst_30 {dimension_numbers = #tpu.dot_dimension_numbers<[1], [0], [0], [1], [0, 0, 1, 1], [], []>} : vector<16x80xbf16>, vector<80x128xbf16>, vector<16x128xf32> -> vector<16x128xf32>
    %57 = arith.mulf %54, %56 : vector<16x128xf32>
    %cst_31 = arith.constant 1.000000e+00 : f32
    %58 = vector.broadcast %cst_31 : f32 to vector<16x128xf32>
    %59 = arith.subf %58, %56 : vector<16x128xf32>
    %c0_32 = arith.constant 0 : index
    %c0_33 = arith.constant 0 : index
    %60 = vector.load %arg10[%c0_32, %c0_33] : memref<16x1024xf32, #tpu.memory_space<vmem>>, vector<16x128xf32>
    %61 = arith.mulf %59, %60 : vector<16x128xf32>
    %62 = arith.addf %57, %61 : vector<16x128xf32>
    %c0_34 = arith.constant 0 : index
    %c0_35 = arith.constant 0 : index
    %63 = vector.load %arg11[%c0_34, %c0_35] : memref<16x1024xf32, #tpu.memory_space<vmem>>, vector<16x128xf32>
    tpu.vector_store %arg11[%c0_34, %c0_35], %62 {strides = array<i32>} : memref<16x1024xf32, #tpu.memory_space<vmem>>, vector<16x128xf32>,
    %c0_36 = arith.constant 0 : index
    %c256 = arith.constant 256 : index
    %64 = vector.load %arg5[%c0_36, %c256] : memref<80x1152xbf16, #tpu.memory_space<vmem>>, vector<80x128xbf16>
    %cst_37 = arith.constant dense<0.000000e+00> : vector<16x128xf32>
    %65 = tpu.matmul %4, %64, %cst_37 {dimension_numbers = #tpu.dot_dimension_numbers<[1], [0], [0], [1], [0, 0, 1, 1], [], []>} : vector<16x80xbf16>, vector<80x128xbf16>, vector<16x128xf32> -> vector<16x128xf32>
    %cst_38 = arith.constant dense<0.000000e+00> : vector<16x128xf32>
    %66 = tpu.matmul %65, %7, %cst_38 {dimension_numbers = #tpu.dot_dimension_numbers<[1], [0], [0], [1], [0, 0, 1, 1], [], []>} : vector<16x128xf32>, vector<128x128xf32>, vector<16x128xf32> -> vector<16x128xf32>
    %67 = vector.broadcast %51 : vector<16x1xf32> to vector<16x128xf32>
    %68 = arith.addf %66, %67 : vector<16x128xf32>
    %69 = math.floor %68 : vector<16x128xf32>
    %70 = arith.subf %68, %69 : vector<16x128xf32>
    %71 = arith.subf %68, %65 : vector<16x128xf32>
    %72 = math.floor %71 : vector<16x128xf32>
    %73 = arith.subf %71, %72 : vector<16x128xf32>
    %74 = arith.subf %70, %73 : vector<16x128xf32>
    %75 = arith.truncf %74 : vector<16x128xf32> to vector<16x128xbf16>
    %cst_39 = arith.constant dense<0.000000e+00> : vector<16xf32>
    %76 = vector.multi_reduction <add>, %65, %cst_39 [1] : vector<16x128xf32> to vector<16xf32>
    %77 = vector.shape_cast %76 : vector<16xf32> to vector<16x1xf32>
    %78 = arith.addf %51, %77 : vector<16x1xf32>
    %cst_40 = arith.constant dense<0.000000e+00> : vector<16x128xf32>
    %79 = tpu.matmul %48, %8, %cst_40 {dimension_numbers = #tpu.dot_dimension_numbers<[1], [0], [0], [1], [0, 0, 1, 1], [], []>} : vector<16x128xbf16>, vector<128x128xbf16>, vector<16x128xf32> -> vector<16x128xf32>
    %cst_41 = arith.constant dense<0.000000e+00> : vector<16x128xf32>
    %80 = tpu.matmul %75, %9, %cst_41 {dimension_numbers = #tpu.dot_dimension_numbers<[1], [0], [0], [1], [0, 0, 1, 1], [], []>} : vector<16x128xbf16>, vector<128x128xbf16>, vector<16x128xf32> -> vector<16x128xf32>
    %81 = arith.addf %79, %80 : vector<16x128xf32>
    %c0_42 = arith.constant 0 : index
    %c128_43 = arith.constant 128 : index
    %82 = vector.load %arg6[%c0_42, %c128_43] : memref<80x1024xbf16, #tpu.memory_space<vmem>>, vector<80x128xbf16>
    %cst_44 = arith.constant dense<0.000000e+00> : vector<16x128xf32>
    %83 = tpu.matmul %6, %82, %cst_44 {dimension_numbers = #tpu.dot_dimension_numbers<[1], [0], [0], [1], [0, 0, 1, 1], [], []>} : vector<16x80xbf16>, vector<80x128xbf16>, vector<16x128xf32> -> vector<16x128xf32>
    %84 = arith.mulf %81, %83 : vector<16x128xf32>
    %cst_45 = arith.constant 1.000000e+00 : f32
    %85 = vector.broadcast %cst_45 : f32 to vector<16x128xf32>
    %86 = arith.subf %85, %83 : vector<16x128xf32>
    %c0_46 = arith.constant 0 : index
    %c128_47 = arith.constant 128 : index
    %87 = vector.load %arg10[%c0_46, %c128_47] : memref<16x1024xf32, #tpu.memory_space<vmem>>, vector<16x128xf32>
    %88 = arith.mulf %86, %87 : vector<16x128xf32>
    %89 = arith.addf %84, %88 : vector<16x128xf32>
    %c0_48 = arith.constant 0 : index
    %c128_49 = arith.constant 128 : index
    %90 = vector.load %arg11[%c0_48, %c128_49] : memref<16x1024xf32, #tpu.memory_space<vmem>>, vector<16x128xf32>
    tpu.vector_store %arg11[%c0_48, %c128_49], %89 {strides = array<i32>} : memref<16x1024xf32, #tpu.memory_space<vmem>>, vector<16x128xf32>,
    %c0_50 = arith.constant 0 : index
    %c384 = arith.constant 384 : index
    %91 = vector.load %arg5[%c0_50, %c384] : memref<80x1152xbf16, #tpu.memory_space<vmem>>, vector<80x128xbf16>
    %cst_51 = arith.constant dense<0.000000e+00> : vector<16x128xf32>
    %92 = tpu.matmul %4, %91, %cst_51 {dimension_numbers = #tpu.dot_dimension_numbers<[1], [0], [0], [1], [0, 0, 1, 1], [], []>} : vector<16x80xbf16>, vector<80x128xbf16>, vector<16x128xf32> -> vector<16x128xf32>
    %cst_52 = arith.constant dense<0.000000e+00> : vector<16x128xf32>
    %93 = tpu.matmul %92, %7, %cst_52 {dimension_numbers = #tpu.dot_dimension_numbers<[1], [0], [0], [1], [0, 0, 1, 1], [], []>} : vector<16x128xf32>, vector<128x128xf32>, vector<16x128xf32> -> vector<16x128xf32>
    %94 = vector.broadcast %78 : vector<16x1xf32> to vector<16x128xf32>
    %95 = arith.addf %93, %94 : vector<16x128xf32>
    %96 = math.floor %95 : vector<16x128xf32>
    %97 = arith.subf %95, %96 : vector<16x128xf32>
    %98 = arith.subf %95, %92 : vector<16x128xf32>
    %99 = math.floor %98 : vector<16x128xf32>
    %100 = arith.subf %98, %99 : vector<16x128xf32>
    %101 = arith.subf %97, %100 : vector<16x128xf32>
    %102 = arith.truncf %101 : vector<16x128xf32> to vector<16x128xbf16>
    %cst_53 = arith.constant dense<0.000000e+00> : vector<16xf32>
    %103 = vector.multi_reduction <add>, %92, %cst_53 [1] : vector<16x128xf32> to vector<16xf32>
    %104 = vector.shape_cast %103 : vector<16xf32> to vector<16x1xf32>
    %105 = arith.addf %78, %104 : vector<16x1xf32>
    %cst_54 = arith.constant dense<0.000000e+00> : vector<16x128xf32>
    %106 = tpu.matmul %75, %8, %cst_54 {dimension_numbers = #tpu.dot_dimension_numbers<[1], [0], [0], [1], [0, 0, 1, 1], [], []>} : vector<16x128xbf16>, vector<128x128xbf16>, vector<16x128xf32> -> vector<16x128xf32>
    %cst_55 = arith.constant dense<0.000000e+00> : vector<16x128xf32>
    %107 = tpu.matmul %102, %9, %cst_55 {dimension_numbers = #tpu.dot_dimension_numbers<[1], [0], [0], [1], [0, 0, 1, 1], [], []>} : vector<16x128xbf16>, vector<128x128xbf16>, vector<16x128xf32> -> vector<16x128xf32>
    %108 = arith.addf %106, %107 : vector<16x128xf32>
    %c0_56 = arith.constant 0 : index
    %c256_57 = arith.constant 256 : index
    %109 = vector.load %arg6[%c0_56, %c256_57] : memref<80x1024xbf16, #tpu.memory_space<vmem>>, vector<80x128xbf16>
    %cst_58 = arith.constant dense<0.000000e+00> : vector<16x128xf32>
    %110 = tpu.matmul %6, %109, %cst_58 {dimension_numbers = #tpu.dot_dimension_numbers<[1], [0], [0], [1], [0, 0, 1, 1], [], []>} : vector<16x80xbf16>, vector<80x128xbf16>, vector<16x128xf32> -> vector<16x128xf32>
    %111 = arith.mulf %108, %110 : vector<16x128xf32>
    %cst_59 = arith.constant 1.000000e+00 : f32
    %112 = vector.broadcast %cst_59 : f32 to vector<16x128xf32>
    %113 = arith.subf %112, %110 : vector<16x128xf32>
    %c0_60 = arith.constant 0 : index
    %c256_61 = arith.constant 256 : index
    %114 = vector.load %arg10[%c0_60, %c256_61] : memref<16x1024xf32, #tpu.memory_space<vmem>>, vector<16x128xf32>
    %115 = arith.mulf %113, %114 : vector<16x128xf32>
    %116 = arith.addf %111, %115 : vector<16x128xf32>
    %c0_62 = arith.constant 0 : index
    %c256_63 = arith.constant 256 : index
    %117 = vector.load %arg11[%c0_62, %c256_63] : memref<16x1024xf32, #tpu.memory_space<vmem>>, vector<16x128xf32>
    tpu.vector_store %arg11[%c0_62, %c256_63], %116 {strides = array<i32>} : memref<16x1024xf32, #tpu.memory_space<vmem>>, vector<16x128xf32>,
    %c0_64 = arith.constant 0 : index
    %c512 = arith.constant 512 : index
    %118 = vector.load %arg5[%c0_64, %c512] : memref<80x1152xbf16, #tpu.memory_space<vmem>>, vector<80x128xbf16>
    %cst_65 = arith.constant dense<0.000000e+00> : vector<16x128xf32>
    %119 = tpu.matmul %4, %118, %cst_65 {dimension_numbers = #tpu.dot_dimension_numbers<[1], [0], [0], [1], [0, 0, 1, 1], [], []>} : vector<16x80xbf16>, vector<80x128xbf16>, vector<16x128xf32> -> vector<16x128xf32>
    %cst_66 = arith.constant dense<0.000000e+00> : vector<16x128xf32>
    %120 = tpu.matmul %119, %7, %cst_66 {dimension_numbers = #tpu.dot_dimension_numbers<[1], [0], [0], [1], [0, 0, 1, 1], [], []>} : vector<16x128xf32>, vector<128x128xf32>, vector<16x128xf32> -> vector<16x128xf32>
    %121 = vector.broadcast %105 : vector<16x1xf32> to vector<16x128xf32>
    %122 = arith.addf %120, %121 : vector<16x128xf32>
    %123 = math.floor %122 : vector<16x128xf32>
    %124 = arith.subf %122, %123 : vector<16x128xf32>
    %125 = arith.subf %122, %119 : vector<16x128xf32>
    %126 = math.floor %125 : vector<16x128xf32>
    %127 = arith.subf %125, %126 : vector<16x128xf32>
    %128 = arith.subf %124, %127 : vector<16x128xf32>
    %129 = tpu.iota {dimensions = array<i32: 1>} : vector<16x128xi32>
    %c512_i32 = arith.constant 512 : i32
    %130 = arith.addi %10, %c512_i32 : i32
    %131 = vector.broadcast %130 : i32 to vector<16x128xi32>
    %132 = arith.addi %129, %131 : vector<16x128xi32>
    %c1536_i32 = arith.constant 1536 : i32
    %133 = vector.broadcast %c1536_i32 : i32 to vector<16x128xi32>
    %134 = arith.cmpi slt, %132, %133 : vector<16x128xi32>
    %cst_67 = arith.constant 0.000000e+00 : f32
    %135 = vector.broadcast %cst_67 : f32 to vector<16x128xf32>
    %136 = arith.select %134, %128, %135 : vector<16x128xi1>, vector<16x128xf32>
    %137 = arith.truncf %136 : vector<16x128xf32> to vector<16x128xbf16>
    %cst_68 = arith.constant dense<0.000000e+00> : vector<16xf32>
    %138 = vector.multi_reduction <add>, %119, %cst_68 [1] : vector<16x128xf32> to vector<16xf32>
    %139 = vector.shape_cast %138 : vector<16xf32> to vector<16x1xf32>
    %140 = arith.addf %105, %139 : vector<16x1xf32>
    %cst_69 = arith.constant dense<0.000000e+00> : vector<16x128xf32>
    %141 = tpu.matmul %102, %8, %cst_69 {dimension_numbers = #tpu.dot_dimension_numbers<[1], [0], [0], [1], [0, 0, 1, 1], [], []>} : vector<16x128xbf16>, vector<128x128xbf16>, vector<16x128xf32> -> vector<16x128xf32>
    %cst_70 = arith.constant dense<0.000000e+00> : vector<16x128xf32>
    %142 = tpu.matmul %137, %9, %cst_70 {dimension_numbers = #tpu.dot_dimension_numbers<[1], [0], [0], [1], [0, 0, 1, 1], [], []>} : vector<16x128xbf16>, vector<128x128xbf16>, vector<16x128xf32> -> vector<16x128xf32>
    %143 = arith.addf %141, %142 : vector<16x128xf32>
    %c0_71 = arith.constant 0 : index
    %c384_72 = arith.constant 384 : index
    %144 = vector.load %arg6[%c0_71, %c384_72] : memref<80x1024xbf16, #tpu.memory_space<vmem>>, vector<80x128xbf16>
    %cst_73 = arith.constant dense<0.000000e+00> : vector<16x128xf32>
    %145 = tpu.matmul %6, %144, %cst_73 {dimension_numbers = #tpu.dot_dimension_numbers<[1], [0], [0], [1], [0, 0, 1, 1], [], []>} : vector<16x80xbf16>, vector<80x128xbf16>, vector<16x128xf32> -> vector<16x128xf32>
    %146 = arith.mulf %143, %145 : vector<16x128xf32>
    %cst_74 = arith.constant 1.000000e+00 : f32
    %147 = vector.broadcast %cst_74 : f32 to vector<16x128xf32>
    %148 = arith.subf %147, %145 : vector<16x128xf32>
    %c0_75 = arith.constant 0 : index
    %c384_76 = arith.constant 384 : index
    %149 = vector.load %arg10[%c0_75, %c384_76] : memref<16x1024xf32, #tpu.memory_space<vmem>>, vector<16x128xf32>
    %150 = arith.mulf %148, %149 : vector<16x128xf32>
    %151 = arith.addf %146, %150 : vector<16x128xf32>
    %c0_77 = arith.constant 0 : index
    %c384_78 = arith.constant 384 : index
    %152 = vector.load %arg11[%c0_77, %c384_78] : memref<16x1024xf32, #tpu.memory_space<vmem>>, vector<16x128xf32>
    tpu.vector_store %arg11[%c0_77, %c384_78], %151 {strides = array<i32>} : memref<16x1024xf32, #tpu.memory_space<vmem>>, vector<16x128xf32>,
    %c0_79 = arith.constant 0 : index
    %c640 = arith.constant 640 : index
    %153 = vector.load %arg5[%c0_79, %c640] : memref<80x1152xbf16, #tpu.memory_space<vmem>>, vector<80x128xbf16>
    %cst_80 = arith.constant dense<0.000000e+00> : vector<16x128xf32>
    %154 = tpu.matmul %4, %153, %cst_80 {dimension_numbers = #tpu.dot_dimension_numbers<[1], [0], [0], [1], [0, 0, 1, 1], [], []>} : vector<16x80xbf16>, vector<80x128xbf16>, vector<16x128xf32> -> vector<16x128xf32>
    %cst_81 = arith.constant dense<0.000000e+00> : vector<16x128xf32>
    %155 = tpu.matmul %154, %7, %cst_81 {dimension_numbers = #tpu.dot_dimension_numbers<[1], [0], [0], [1], [0, 0, 1, 1], [], []>} : vector<16x128xf32>, vector<128x128xf32>, vector<16x128xf32> -> vector<16x128xf32>
    %156 = vector.broadcast %140 : vector<16x1xf32> to vector<16x128xf32>
    %157 = arith.addf %155, %156 : vector<16x128xf32>
    %158 = math.floor %157 : vector<16x128xf32>
    %159 = arith.subf %157, %158 : vector<16x128xf32>
    %160 = arith.subf %157, %154 : vector<16x128xf32>
    %161 = math.floor %160 : vector<16x128xf32>
    %162 = arith.subf %160, %161 : vector<16x128xf32>
    %163 = arith.subf %159, %162 : vector<16x128xf32>
    %164 = tpu.iota {dimensions = array<i32: 1>} : vector<16x128xi32>
    %c640_i32 = arith.constant 640 : i32
    %165 = arith.addi %10, %c640_i32 : i32
    %166 = vector.broadcast %165 : i32 to vector<16x128xi32>
    %167 = arith.addi %164, %166 : vector<16x128xi32>
    %c1536_i32_82 = arith.constant 1536 : i32
    %168 = vector.broadcast %c1536_i32_82 : i32 to vector<16x128xi32>
    %169 = arith.cmpi slt, %167, %168 : vector<16x128xi32>
    %cst_83 = arith.constant 0.000000e+00 : f32
    %170 = vector.broadcast %cst_83 : f32 to vector<16x128xf32>
    %171 = arith.select %169, %163, %170 : vector<16x128xi1>, vector<16x128xf32>
    %172 = arith.truncf %171 : vector<16x128xf32> to vector<16x128xbf16>
    %cst_84 = arith.constant dense<0.000000e+00> : vector<16xf32>
    %173 = vector.multi_reduction <add>, %154, %cst_84 [1] : vector<16x128xf32> to vector<16xf32>
    %174 = vector.shape_cast %173 : vector<16xf32> to vector<16x1xf32>
    %175 = arith.addf %140, %174 : vector<16x1xf32>
    %cst_85 = arith.constant dense<0.000000e+00> : vector<16x128xf32>
    %176 = tpu.matmul %137, %8, %cst_85 {dimension_numbers = #tpu.dot_dimension_numbers<[1], [0], [0], [1], [0, 0, 1, 1], [], []>} : vector<16x128xbf16>, vector<128x128xbf16>, vector<16x128xf32> -> vector<16x128xf32>
    %cst_86 = arith.constant dense<0.000000e+00> : vector<16x128xf32>
    %177 = tpu.matmul %172, %9, %cst_86 {dimension_numbers = #tpu.dot_dimension_numbers<[1], [0], [0], [1], [0, 0, 1, 1], [], []>} : vector<16x128xbf16>, vector<128x128xbf16>, vector<16x128xf32> -> vector<16x128xf32>
    %178 = arith.addf %176, %177 : vector<16x128xf32>
    %c0_87 = arith.constant 0 : index
    %c512_88 = arith.constant 512 : index
    %179 = vector.load %arg6[%c0_87, %c512_88] : memref<80x1024xbf16, #tpu.memory_space<vmem>>, vector<80x128xbf16>
    %cst_89 = arith.constant dense<0.000000e+00> : vector<16x128xf32>
    %180 = tpu.matmul %6, %179, %cst_89 {dimension_numbers = #tpu.dot_dimension_numbers<[1], [0], [0], [1], [0, 0, 1, 1], [], []>} : vector<16x80xbf16>, vector<80x128xbf16>, vector<16x128xf32> -> vector<16x128xf32>
    %181 = arith.mulf %178, %180 : vector<16x128xf32>
    %cst_90 = arith.constant 1.000000e+00 : f32
    %182 = vector.broadcast %cst_90 : f32 to vector<16x128xf32>
    %183 = arith.subf %182, %180 : vector<16x128xf32>
    %c0_91 = arith.constant 0 : index
    %c512_92 = arith.constant 512 : index
    %184 = vector.load %arg10[%c0_91, %c512_92] : memref<16x1024xf32, #tpu.memory_space<vmem>>, vector<16x128xf32>
    %185 = arith.mulf %183, %184 : vector<16x128xf32>
    %186 = arith.addf %181, %185 : vector<16x128xf32>
    %c0_93 = arith.constant 0 : index
    %c512_94 = arith.constant 512 : index
    %187 = vector.load %arg11[%c0_93, %c512_94] : memref<16x1024xf32, #tpu.memory_space<vmem>>, vector<16x128xf32>
    tpu.vector_store %arg11[%c0_93, %c512_94], %186 {strides = array<i32>} : memref<16x1024xf32, #tpu.memory_space<vmem>>, vector<16x128xf32>,
    %c0_95 = arith.constant 0 : index
    %c768 = arith.constant 768 : index
    %188 = vector.load %arg5[%c0_95, %c768] : memref<80x1152xbf16, #tpu.memory_space<vmem>>, vector<80x128xbf16>
    %cst_96 = arith.constant dense<0.000000e+00> : vector<16x128xf32>
    %189 = tpu.matmul %4, %188, %cst_96 {dimension_numbers = #tpu.dot_dimension_numbers<[1], [0], [0], [1], [0, 0, 1, 1], [], []>} : vector<16x80xbf16>, vector<80x128xbf16>, vector<16x128xf32> -> vector<16x128xf32>
    %cst_97 = arith.constant dense<0.000000e+00> : vector<16x128xf32>
    %190 = tpu.matmul %189, %7, %cst_97 {dimension_numbers = #tpu.dot_dimension_numbers<[1], [0], [0], [1], [0, 0, 1, 1], [], []>} : vector<16x128xf32>, vector<128x128xf32>, vector<16x128xf32> -> vector<16x128xf32>
    %191 = vector.broadcast %175 : vector<16x1xf32> to vector<16x128xf32>
    %192 = arith.addf %190, %191 : vector<16x128xf32>
    %193 = math.floor %192 : vector<16x128xf32>
    %194 = arith.subf %192, %193 : vector<16x128xf32>
    %195 = arith.subf %192, %189 : vector<16x128xf32>
    %196 = math.floor %195 : vector<16x128xf32>
    %197 = arith.subf %195, %196 : vector<16x128xf32>
    %198 = arith.subf %194, %197 : vector<16x128xf32>
    %199 = tpu.iota {dimensions = array<i32: 1>} : vector<16x128xi32>
    %c768_i32 = arith.constant 768 : i32
    %200 = arith.addi %10, %c768_i32 : i32
    %201 = vector.broadcast %200 : i32 to vector<16x128xi32>
    %202 = arith.addi %199, %201 : vector<16x128xi32>
    %c1536_i32_98 = arith.constant 1536 : i32
    %203 = vector.broadcast %c1536_i32_98 : i32 to vector<16x128xi32>
    %204 = arith.cmpi slt, %202, %203 : vector<16x128xi32>
    %cst_99 = arith.constant 0.000000e+00 : f32
    %205 = vector.broadcast %cst_99 : f32 to vector<16x128xf32>
    %206 = arith.select %204, %198, %205 : vector<16x128xi1>, vector<16x128xf32>
    %207 = arith.truncf %206 : vector<16x128xf32> to vector<16x128xbf16>
    %cst_100 = arith.constant dense<0.000000e+00> : vector<16xf32>
    %208 = vector.multi_reduction <add>, %189, %cst_100 [1] : vector<16x128xf32> to vector<16xf32>
    %209 = vector.shape_cast %208 : vector<16xf32> to vector<16x1xf32>
    %210 = arith.addf %175, %209 : vector<16x1xf32>
    %cst_101 = arith.constant dense<0.000000e+00> : vector<16x128xf32>
    %211 = tpu.matmul %172, %8, %cst_101 {dimension_numbers = #tpu.dot_dimension_numbers<[1], [0], [0], [1], [0, 0, 1, 1], [], []>} : vector<16x128xbf16>, vector<128x128xbf16>, vector<16x128xf32> -> vector<16x128xf32>
    %cst_102 = arith.constant dense<0.000000e+00> : vector<16x128xf32>
    %212 = tpu.matmul %207, %9, %cst_102 {dimension_numbers = #tpu.dot_dimension_numbers<[1], [0], [0], [1], [0, 0, 1, 1], [], []>} : vector<16x128xbf16>, vector<128x128xbf16>, vector<16x128xf32> -> vector<16x128xf32>
    %213 = arith.addf %211, %212 : vector<16x128xf32>
    %c0_103 = arith.constant 0 : index
    %c640_104 = arith.constant 640 : index
    %214 = vector.load %arg6[%c0_103, %c640_104] : memref<80x1024xbf16, #tpu.memory_space<vmem>>, vector<80x128xbf16>
    %cst_105 = arith.constant dense<0.000000e+00> : vector<16x128xf32>
    %215 = tpu.matmul %6, %214, %cst_105 {dimension_numbers = #tpu.dot_dimension_numbers<[1], [0], [0], [1], [0, 0, 1, 1], [], []>} : vector<16x80xbf16>, vector<80x128xbf16>, vector<16x128xf32> -> vector<16x128xf32>
    %216 = arith.mulf %213, %215 : vector<16x128xf32>
    %cst_106 = arith.constant 1.000000e+00 : f32
    %217 = vector.broadcast %cst_106 : f32 to vector<16x128xf32>
    %218 = arith.subf %217, %215 : vector<16x128xf32>
    %c0_107 = arith.constant 0 : index
    %c640_108 = arith.constant 640 : index
    %219 = vector.load %arg10[%c0_107, %c640_108] : memref<16x1024xf32, #tpu.memory_space<vmem>>, vector<16x128xf32>
    %220 = arith.mulf %218, %219 : vector<16x128xf32>
    %221 = arith.addf %216, %220 : vector<16x128xf32>
    %c0_109 = arith.constant 0 : index
    %c640_110 = arith.constant 640 : index
    %222 = vector.load %arg11[%c0_109, %c640_110] : memref<16x1024xf32, #tpu.memory_space<vmem>>, vector<16x128xf32>
    tpu.vector_store %arg11[%c0_109, %c640_110], %221 {strides = array<i32>} : memref<16x1024xf32, #tpu.memory_space<vmem>>, vector<16x128xf32>,
    %c0_111 = arith.constant 0 : index
    %c896 = arith.constant 896 : index
    %223 = vector.load %arg5[%c0_111, %c896] : memref<80x1152xbf16, #tpu.memory_space<vmem>>, vector<80x128xbf16>
    %cst_112 = arith.constant dense<0.000000e+00> : vector<16x128xf32>
    %224 = tpu.matmul %4, %223, %cst_112 {dimension_numbers = #tpu.dot_dimension_numbers<[1], [0], [0], [1], [0, 0, 1, 1], [], []>} : vector<16x80xbf16>, vector<80x128xbf16>, vector<16x128xf32> -> vector<16x128xf32>
    %cst_113 = arith.constant dense<0.000000e+00> : vector<16x128xf32>
    %225 = tpu.matmul %224, %7, %cst_113 {dimension_numbers = #tpu.dot_dimension_numbers<[1], [0], [0], [1], [0, 0, 1, 1], [], []>} : vector<16x128xf32>, vector<128x128xf32>, vector<16x128xf32> -> vector<16x128xf32>
    %226 = vector.broadcast %210 : vector<16x1xf32> to vector<16x128xf32>
    %227 = arith.addf %225, %226 : vector<16x128xf32>
    %228 = math.floor %227 : vector<16x128xf32>
    %229 = arith.subf %227, %228 : vector<16x128xf32>
    %230 = arith.subf %227, %224 : vector<16x128xf32>
    %231 = math.floor %230 : vector<16x128xf32>
    %232 = arith.subf %230, %231 : vector<16x128xf32>
    %233 = arith.subf %229, %232 : vector<16x128xf32>
    %234 = tpu.iota {dimensions = array<i32: 1>} : vector<16x128xi32>
    %c896_i32 = arith.constant 896 : i32
    %235 = arith.addi %10, %c896_i32 : i32
    %236 = vector.broadcast %235 : i32 to vector<16x128xi32>
    %237 = arith.addi %234, %236 : vector<16x128xi32>
    %c1536_i32_114 = arith.constant 1536 : i32
    %238 = vector.broadcast %c1536_i32_114 : i32 to vector<16x128xi32>
    %239 = arith.cmpi slt, %237, %238 : vector<16x128xi32>
    %cst_115 = arith.constant 0.000000e+00 : f32
    %240 = vector.broadcast %cst_115 : f32 to vector<16x128xf32>
    %241 = arith.select %239, %233, %240 : vector<16x128xi1>, vector<16x128xf32>
    %242 = arith.truncf %241 : vector<16x128xf32> to vector<16x128xbf16>
    %cst_116 = arith.constant dense<0.000000e+00> : vector<16xf32>
    %243 = vector.multi_reduction <add>, %224, %cst_116 [1] : vector<16x128xf32> to vector<16xf32>
    %244 = vector.shape_cast %243 : vector<16xf32> to vector<16x1xf32>
    %245 = arith.addf %210, %244 : vector<16x1xf32>
    %246 = math.floor %245 : vector<16x1xf32>
    %247 = arith.subf %245, %246 : vector<16x1xf32>
    %c0_117 = arith.constant 0 : index
    %c0_118 = arith.constant 0 : index
    %248 = vector.load %arg12[%c0_117, %c0_118] : memref<16x1xf32, #tpu.memory_space<vmem>>, vector<16x1xf32>
    tpu.vector_store %arg12[%c0_117, %c0_118], %247 {strides = array<i32>} : memref<16x1xf32, #tpu.memory_space<vmem>>, vector<16x1xf32>,
    %cst_119 = arith.constant dense<0.000000e+00> : vector<16x128xf32>
    %249 = tpu.matmul %207, %8, %cst_119 {dimension_numbers = #tpu.dot_dimension_numbers<[1], [0], [0], [1], [0, 0, 1, 1], [], []>} : vector<16x128xbf16>, vector<128x128xbf16>, vector<16x128xf32> -> vector<16x128xf32>
    %cst_120 = arith.constant dense<0.000000e+00> : vector<16x128xf32>
    %250 = tpu.matmul %242, %9, %cst_120 {dimension_numbers = #tpu.dot_dimension_numbers<[1], [0], [0], [1], [0, 0, 1, 1], [], []>} : vector<16x128xbf16>, vector<128x128xbf16>, vector<16x128xf32> -> vector<16x128xf32>
    %251 = arith.addf %249, %250 : vector<16x128xf32>
    %c0_121 = arith.constant 0 : index
    %c768_122 = arith.constant 768 : index
    %252 = vector.load %arg6[%c0_121, %c768_122] : memref<80x1024xbf16, #tpu.memory_space<vmem>>, vector<80x128xbf16>
    %cst_123 = arith.constant dense<0.000000e+00> : vector<16x128xf32>
    %253 = tpu.matmul %6, %252, %cst_123 {dimension_numbers = #tpu.dot_dimension_numbers<[1], [0], [0], [1], [0, 0, 1, 1], [], []>} : vector<16x80xbf16>, vector<80x128xbf16>, vector<16x128xf32> -> vector<16x128xf32>
    %254 = arith.mulf %251, %253 : vector<16x128xf32>
    %cst_124 = arith.constant 1.000000e+00 : f32
    %255 = vector.broadcast %cst_124 : f32 to vector<16x128xf32>
    %256 = arith.subf %255, %253 : vector<16x128xf32>
    %c0_125 = arith.constant 0 : index
    %c768_126 = arith.constant 768 : index
    %257 = vector.load %arg10[%c0_125, %c768_126] : memref<16x1024xf32, #tpu.memory_space<vmem>>, vector<16x128xf32>
    %258 = arith.mulf %256, %257 : vector<16x128xf32>
    %259 = arith.addf %254, %258 : vector<16x128xf32>
    %c0_127 = arith.constant 0 : index
    %c768_128 = arith.constant 768 : index
    %260 = vector.load %arg11[%c0_127, %c768_128] : memref<16x1024xf32, #tpu.memory_space<vmem>>, vector<16x128xf32>
    tpu.vector_store %arg11[%c0_127, %c768_128], %259 {strides = array<i32>} : memref<16x1024xf32, #tpu.memory_space<vmem>>, vector<16x128xf32>,
    %c0_129 = arith.constant 0 : index
    %c1024 = arith.constant 1024 : index
    %261 = vector.load %arg5[%c0_129, %c1024] : memref<80x1152xbf16, #tpu.memory_space<vmem>>, vector<80x128xbf16>
    %cst_130 = arith.constant dense<0.000000e+00> : vector<16x128xf32>
    %262 = tpu.matmul %4, %261, %cst_130 {dimension_numbers = #tpu.dot_dimension_numbers<[1], [0], [0], [1], [0, 0, 1, 1], [], []>} : vector<16x80xbf16>, vector<80x128xbf16>, vector<16x128xf32> -> vector<16x128xf32>
    %cst_131 = arith.constant dense<0.000000e+00> : vector<16x128xf32>
    %263 = tpu.matmul %262, %7, %cst_131 {dimension_numbers = #tpu.dot_dimension_numbers<[1], [0], [0], [1], [0, 0, 1, 1], [], []>} : vector<16x128xf32>, vector<128x128xf32>, vector<16x128xf32> -> vector<16x128xf32>
    %264 = vector.broadcast %245 : vector<16x1xf32> to vector<16x128xf32>
    %265 = arith.addf %263, %264 : vector<16x128xf32>
    %266 = math.floor %265 : vector<16x128xf32>
    %267 = arith.subf %265, %266 : vector<16x128xf32>
    %268 = arith.subf %265, %262 : vector<16x128xf32>
    %269 = math.floor %268 : vector<16x128xf32>
    %270 = arith.subf %268, %269 : vector<16x128xf32>
    %271 = arith.subf %267, %270 : vector<16x128xf32>
    %272 = tpu.iota {dimensions = array<i32: 1>} : vector<16x128xi32>
    %c1024_i32_132 = arith.constant 1024 : i32
    %273 = arith.addi %10, %c1024_i32_132 : i32
    %274 = vector.broadcast %273 : i32 to vector<16x128xi32>
    %275 = arith.addi %272, %274 : vector<16x128xi32>
    %c1536_i32_133 = arith.constant 1536 : i32
    %276 = vector.broadcast %c1536_i32_133 : i32 to vector<16x128xi32>
    %277 = arith.cmpi slt, %275, %276 : vector<16x128xi32>
    %cst_134 = arith.constant 0.000000e+00 : f32
    %278 = vector.broadcast %cst_134 : f32 to vector<16x128xf32>
    %279 = arith.select %277, %271, %278 : vector<16x128xi1>, vector<16x128xf32>
    %280 = arith.truncf %279 : vector<16x128xf32> to vector<16x128xbf16>
    %cst_135 = arith.constant dense<0.000000e+00> : vector<16x128xf32>
    %281 = tpu.matmul %242, %8, %cst_135 {dimension_numbers = #tpu.dot_dimension_numbers<[1], [0], [0], [1], [0, 0, 1, 1], [], []>} : vector<16x128xbf16>, vector<128x128xbf16>, vector<16x128xf32> -> vector<16x128xf32>
    %cst_136 = arith.constant dense<0.000000e+00> : vector<16x128xf32>
    %282 = tpu.matmul %280, %9, %cst_136 {dimension_numbers = #tpu.dot_dimension_numbers<[1], [0], [0], [1], [0, 0, 1, 1], [], []>} : vector<16x128xbf16>, vector<128x128xbf16>, vector<16x128xf32> -> vector<16x128xf32>
    %283 = arith.addf %281, %282 : vector<16x128xf32>
    %c0_137 = arith.constant 0 : index
    %c896_138 = arith.constant 896 : index
    %284 = vector.load %arg6[%c0_137, %c896_138] : memref<80x1024xbf16, #tpu.memory_space<vmem>>, vector<80x128xbf16>
    %cst_139 = arith.constant dense<0.000000e+00> : vector<16x128xf32>
    %285 = tpu.matmul %6, %284, %cst_139 {dimension_numbers = #tpu.dot_dimension_numbers<[1], [0], [0], [1], [0, 0, 1, 1], [], []>} : vector<16x80xbf16>, vector<80x128xbf16>, vector<16x128xf32> -> vector<16x128xf32>
    %286 = arith.mulf %283, %285 : vector<16x128xf32>
    %cst_140 = arith.constant 1.000000e+00 : f32
    %287 = vector.broadcast %cst_140 : f32 to vector<16x128xf32>
    %288 = arith.subf %287, %285 : vector<16x128xf32>
    %c0_141 = arith.constant 0 : index
    %c896_142 = arith.constant 896 : index
    %289 = vector.load %arg10[%c0_141, %c896_142] : memref<16x1024xf32, #tpu.memory_space<vmem>>, vector<16x128xf32>
    %290 = arith.mulf %288, %289 : vector<16x128xf32>
    %291 = arith.addf %286, %290 : vector<16x128xf32>
    %c0_143 = arith.constant 0 : index
    %c896_144 = arith.constant 896 : index
    %292 = vector.load %arg11[%c0_143, %c896_144] : memref<16x1024xf32, #tpu.memory_space<vmem>>, vector<16x128xf32>
    tpu.vector_store %arg11[%c0_143, %c896_144], %291 {strides = array<i32>} : memref<16x1024xf32, #tpu.memory_space<vmem>>, vector<16x128xf32>,
    return
  }
  func.func @transform_0(%arg0: i32, %arg1: i32) -> (i32, i32, i32) {
    %c0_i32 = arith.constant 0 : i32
    %c0_i32_0 = arith.constant 0 : i32
    return %arg1, %arg0, %c0_i32 : i32, i32, i32
  }
  func.func @transform_1(%arg0: i32, %arg1: i32) -> (i32, i32, i32) {
    %c0_i32 = arith.constant 0 : i32
    %c0_i32_0 = arith.constant 0 : i32
    return %arg1, %arg0, %c0_i32 : i32, i32, i32
  }
  func.func @transform_2(%arg0: i32, %arg1: i32) -> (i32, i32) {
    %c0_i32 = arith.constant 0 : i32
    %c0_i32_0 = arith.constant 0 : i32
    return %arg0, %c0_i32 : i32, i32
  }
  func.func @transform_3(%arg0: i32, %arg1: i32) -> (i32, i32) {
    %c0_i32 = arith.constant 0 : i32
    %c0_i32_0 = arith.constant 0 : i32
    %c0_i32_1 = arith.constant 0 : i32
    return %c0_i32, %c0_i32_0 : i32, i32
  }
  func.func @transform_4(%arg0: i32, %arg1: i32) -> (i32, i32) {
    %c0_i32 = arith.constant 0 : i32
    %c0_i32_0 = arith.constant 0 : i32
    %c0_i32_1 = arith.constant 0 : i32
    return %c0_i32, %c0_i32_0 : i32, i32
  }
  func.func @transform_5(%arg0: i32, %arg1: i32) -> (i32, i32) {
    %c0_i32 = arith.constant 0 : i32
    %c0_i32_0 = arith.constant 0 : i32
    %c0_i32_1 = arith.constant 0 : i32
    return %c0_i32, %c0_i32_0 : i32, i32
  }
  func.func @transform_6(%arg0: i32, %arg1: i32) -> (i32, i32) {
    %c0_i32 = arith.constant 0 : i32
    %c0_i32_0 = arith.constant 0 : i32
    %c0_i32_1 = arith.constant 0 : i32
    return %c0_i32, %c0_i32_0 : i32, i32
  }
  func.func @transform_7(%arg0: i32, %arg1: i32) -> (i32, i32) {
    %c0_i32 = arith.constant 0 : i32
    %c0_i32_0 = arith.constant 0 : i32
    %c0_i32_1 = arith.constant 0 : i32
    return %c0_i32, %c0_i32_0 : i32, i32
  }
  func.func @transform_8(%arg0: i32, %arg1: i32) -> (i32, i32) {
    %c0_i32 = arith.constant 0 : i32
    return %arg0, %arg1 : i32, i32
  }
  func.func @transform_9(%arg0: i32, %arg1: i32) -> (i32, i32) {
    %c0_i32 = arith.constant 0 : i32
    return %arg0, %arg1 : i32, i32
  }
}

</mosaic_0001>

<bundles_post_ra>
// kernel: tpu_custom_call.1
= control target key start
LH: loop header
LB: loop body
LE: loop exit
PB: predicated region body
PF: predicated region fallthrough
CT: control target
= control target key end

     0   :  { %s4716_s0 = inlined_call_operand.vmem [shape: bf16[2,16,80], index: 0, kind: input, shape index: {}]   ;;  %s4717_s1 = inlined_call_operand.hbm [shape: bf16[2,16,80], index: 1, kind: input, shape index: {}]   ;;  %s4718_s2 = inlined_call_operand.vmem [shape: f32[16,1], index: 2, kind: input, shape index: {}]   ;;  %s4719_s3 = inlined_call_operand.hbm [shape: bf16[80,1152], index: 3, kind: input, shape index: {}]   ;;  %s4720_s4 = inlined_call_operand.hbm [shape: bf16[80,1024], index: 4, kind: input, shape index: {}]   ;;  %s4721_s5 = inlined_call_operand.hbm [shape: f32[128,128], index: 5, kind: input, shape index: {}]   ;;  %s4722_s6 = inlined_call_operand.hbm [shape: bf16[128,128], index: 6, kind: input, shape index: {}]   ;;  %s4723_s7 = inlined_call_operand.hbm [shape: bf16[128,128], index: 7, kind: input, shape index: {}]   ;;  %s4724_s8 = inlined_call_operand.hbm [shape: f32[16,2048], index: 8, kind: input, shape index: {}]   ;;  %s4725_s9 = inlined_call_operand.hbm [shape: f32[16,2048], index: 9, kind: output, shape index: {}]  }
   0x1   :  { %4734 = sst [smem:[#allocation28_spill]] %s4718_s2 }
   0x2   :  { %4735 = sst [smem:[#allocation29_spill]] %s4719_s3 }
   0x3   :  { %4736 = sst [smem:[#allocation30_spill]] %s4721_s5 }
   0x4   :  { %4737 = sst [smem:[#allocation31_spill]] %s4725_s9 }
   0x5   :  { %14 = vsyncpa [#allocation4], 0 }
   0x6   :  { %16 = vsyncpa [#allocation4 + $0x1], 0 }
   0x7   :  { %17 = vsyncpa [#allocation7], 0 }
   0x8   :  { %18 = vsyncpa [#allocation10], 0 }
   0x9   :  { %19 = vsyncpa [#allocation13], 0 }
   0xa   :  { %20 = vsyncpa [#allocation5], 0 }
   0xb   :  { %22 = vsyncpa [#allocation5 + $0x1], 0  ;;  %s3854_s30 = smov 0   ;;  %s3856_s10 = smov 0  }
   0xc   :  { %s3858_s11 = smov 0   ;;  %s3860_s12 = smov 0  }
   0xd   :  { %s3862_s13 = smov 0   ;;  %s3864_s14 = smov 0  }
   0xe LB: > { %4738 = sst [smem:[#allocation22_spill]] %s3762_s30  ;;  %s3885_s15 = sadd.s32 4294967295, %s3782_s14   ;;  %s3782_s14 = sphi %s3864_s14, %s28_s14   ;;  %s3778_s13 = sphi %s3862_s13, %s4764_s13   ;;  %s3774_s12 = sphi %s3860_s12, %s4763_s12   ;;  %s3770_s11 = sphi %s3858_s11, %s4759_s11   ;;  %s3766_s10 = sphi %s3856_s10, %s4762_s10   ;;  %s3762_s30 = sphi %s3854_s30, %s4761_s30  }
   0xf   : > { %4739 = sst [smem:[#allocation23_spill]] %s3770_s11  ;;  %p2709_p0 = scmp.ge.s32.totalorder %s3782_s14, 1 }
  0x10   : > { %4740 = sst [smem:[#allocation24_spill]] %s3782_s14  ;;  %p91_p1 = scmp.eq.s32.totalorder %s3885_s15, 0 }
  0x11   : > { %p288_p2 = scmp.lt.s32.totalorder %s3782_s14, 3  ;;  %s4741_s3 = sld [smem:[#allocation29_spill]] }
  0x12   : > { %s3784_s20 = smov [#allocation6]   ;;  %p2716_p6 = scmp.ge.s32.totalorder %s3782_s14, 2 }
  0x13   : > { %p3893_p3 = pnand %p2709_p0, %p288_p2  ;;  %s310_s21 = sshll.u32 %s3784_s20, 4  ;;  %s311_s21 = int_to_ptr.vmem [resolvable:$true] %s310_s21 }
  0x14   : > { %s4744_s5 = sld [smem:[#allocation30_spill]]  ;;  %s3785_s26 = smov 576  }
  0x15   : > { %p3330_p4 = pneg %p3893_p3  ;;  %s3786_s27 = smov 36  }
  0x16   : > { %s3787_s28 = smov [#allocation9]   ;;  %s3788_s16 = smov 128  }
  0x17   : > { %s308_s18 = sshll.u32 %s4741_s3, 4  ;;  %p3901_p5 = pnand %p3330_p4, %p91_p1  ;;  %s309_s18 = int_to_ptr.hbm [resolvable:$true] %s308_s18 }
  0x18   : > { %s338_s29 = sshll.u32 %s3787_s28, 4  ;;  %s3789_s17 = smov 8   ;;  %s339_s29 = int_to_ptr.vmem [resolvable:$true] %s338_s29 }
  0x19   : > { %3333 = dma.hbm_to_vmem [thread:$0]  (!%p3901_p5), %s309_s18, 5760, %s311_s21, [#allocation7], %s3785_s26, %s3785_s26, %s3786_s27  }
  0x1a   : > { %s336_s25 = sshll.u32 %s4744_s5, 4  ;;  %s2708_s20 = sadd.s32 4294967294, %s3782_s14   ;;  %s337_s25 = int_to_ptr.hbm [resolvable:$true] %s336_s25 }
  0x1b   : > { %3339 = dma.hbm_to_vmem [thread:$0]  (!%p3901_p5), %s337_s25, 2048, %s339_s29, [#allocation10], %s3788_s16, %s3788_s16, %s3789_s17  }
  0x1c   : > { %s37_s23 = sadd.s32 1, %s3778_s13  ;;  %s77_s24 = sadd.s32 1, %s3770_s11 }
  0x1d   : > { %p38_p7 = scmp.ge.s32.totalorder %s37_s23, 2  ;;  %p84_p8 = scmp.ne.s32.totalorder %s3770_s11, %s3766_s10 }
  0x1e   : > { %p85_p9 = scmp.eq.s32.totalorder %s3782_s14, 0  ;;  %p90_p11 = scmp.ne.s32.totalorder %s3766_s10, %s3762_s30 }
  0x1f   : > { %s4766_s23 = smov (%p38_p7, %s37_s23), 0  ;;  %p275_p12 = scmp.eq.s32.totalorder %s3885_s15, 1 }
  0x20   : > { %4745 = sst [smem:[#allocation25_spill]] %s4766_s23  ;;  %p3921_p10 = por %p85_p9, %p84_p8 }
  0x21   : > { %s72_s21 = ssub.s32 %s3778_s13, %s4766_s23  ;;  %p3932_p0 = por %p91_p1, %p90_p11 }
  0x22   : > { %p75_p13 = scmp.eq.s32.totalorder %s72_s21, 0  ;;  %p3936_p2 = por %p275_p12, %p84_p8 }
  0x23   : > { %p281_p4 = scmp.eq.s32.totalorder %s2708_s20, 1  ;;  %p3362_p9 = scmp.lt.s32.totalorder %s3782_s14, 2 }
  0x24   : > { %s3941_s27 = scalar_select %p75_p13, %s3770_s11, %s77_s24  }
  0x25   : > { %p3943_p7 = por %p281_p4, %p90_p11  ;;  %s393_s29 = sand.u32 1, %s3782_s14  }
  0x26   : > { %4749 = sst [smem:[#allocation26_spill]] %s3941_s27  ;;  %s395_s16 = sand.u32 1, %s3770_s11  }
  0x27   : > { %s4750_s28 = scalar_select %p3943_p7, 1, 0 }
  0x28   : > { %s2717_s17 = sshll.u32 %s395_s16, 3  ;;  %s3197_s21 = sshll.u32 %s3778_s13, 3 }
  0x29   : > { %4751 = sst [smem:[#allocation27_spill]] %s4750_s28  ;;  %s404_s23 = scalar_lea.hbm %s4717_s1, %s3197_s21 }
  0x2a   : > { %s397_s30 = scalar_lea.vmem [#allocation3], %s2717_s17  ;;  %s405_s2 = sshll.u32 %s404_s23, 4  ;;  %s406_s2 = int_to_ptr.hbm [resolvable:$true] %s405_s2 }
  0x2b   : > { %s407_s9 = sshll.u32 %s397_s30, 4  ;;  %p3956_p8 = pnand %p3362_p9, %p3921_p10  ;;  %s408_s9 = int_to_ptr.vmem [resolvable:$true] %s407_s9 }
  0x2c   : > { %s2720_s24 = sshll.u32 %s395_s16, 7  ;;  %s322_s14 = sshll.u32 %s4720_s4, 4  ;;  %s323_s14 = int_to_ptr.hbm [resolvable:$true] %s322_s14 }
  0x2d   : > { %s3963_s28 = scalar_lea.sflag [#allocation4], %s393_s29  ;;  %s3790_s3 = smov 64  }
  0x2e   : > { %s3791_s5 = smov 4   ;;  %s421_s30 = scalar_lea.vmem [#allocation14], %s2720_s24 }
  0x2f   : > { %3349 = dma.hbm_to_vmem [thread:$0]  (!%p3956_p8), %s406_s2, 128, %s408_s9, %s3963_s28, %s3790_s3, %s3790_s3, %s3791_s5  }
  0x30   : > { %s3970_s23 = sshll.u32 %s421_s30, 4  ;;  %s3792_s18 = smov [#allocation8]   ;;  %s433_s23 = int_to_ptr.vmem [resolvable:$true] %s3970_s23 }
  0x31   : > { %s324_s11 = sshll.u32 %s3792_s18, 4  ;;  %s3793_s27 = smov 512   ;;  %s325_s11 = int_to_ptr.vmem [resolvable:$true] %s324_s11 }
  0x32   : > { %s3794_s29 = smov 32   ;;  %s350_s2 = sshll.u32 %s4722_s6, 4  ;;  %s351_s2 = int_to_ptr.hbm [resolvable:$true] %s350_s2 }
  0x33   : > { %3336 = dma.hbm_to_vmem [thread:$0]  (!%p3901_p5), %s323_s14, 5120, %s325_s11, [#allocation7], %s3793_s27, %s3793_s27, %s3794_s29  }
  0x34   : > { %s3795_s9 = smov [#allocation11]   ;;  %s364_s18 = sshll.u32 %s4723_s7, 4  ;;  %s365_s18 = int_to_ptr.hbm [resolvable:$true] %s364_s18 }
  0x35   : > { %s352_s21 = sshll.u32 %s3795_s9, 4  ;;  %s3796_s14 = smov [#allocation12]   ;;  %s353_s21 = int_to_ptr.vmem [resolvable:$true] %s352_s21 }
  0x36   : > { %3342 = dma.hbm_to_vmem [thread:$0]  (!%p3901_p5), %s351_s2, 1024, %s353_s21, [#allocation10], %s3790_s3, %s3790_s3, %s3791_s5  }
  0x37   : > { %s366_s11 = sshll.u32 %s3796_s14, 4  ;;  %s3198_s27 = sshll.u32 %s3778_s13, 6  ;;  %s367_s11 = int_to_ptr.vmem [resolvable:$true] %s366_s11 }
  0x38   : > { %s429_s17 = scalar_lea.hbm %s4724_s8, %s3198_s27  ;;  %s3797_s24 = smov 2048  }
  0x39   : > { %3345 = dma.hbm_to_vmem [thread:$0]  (!%p3901_p5), %s365_s18, 1024, %s367_s11, [#allocation13], %s3790_s3, %s3790_s3, %s3791_s5  }
  0x3a   : > { %s430_s9 = sshll.u32 %s429_s17, 4  ;;  %s3798_s30 = smov 1024   ;;  %s431_s9 = int_to_ptr.hbm [resolvable:$true] %s430_s9 }
  0x3b   : > { %3352 = dma.hbm_to_vmem [thread:$0]  (!%p3956_p8), %s431_s9, 2048, %s433_s23, %s3963_s28, %s3797_s24, %s3798_s30, %s3790_s3  }
  0x3c   : > { %444 = sbr.rel (%p3893_p3) target bundleno = 1502 (0x5de), region = 56  ;;  %s446_s2 = sand.u32 (!%p3893_p3), 1, %s3885_s15  }
  0x3d   : > { %s4003_s21 = sand.u32 (!%p3893_p3), 1, %s3766_s10   ;;  %s447_s5 = scalar_lea.sflag (!%p3893_p3), [#allocation4], %s446_s2 }
  0x3e   : > { %s2724_s22 = sshll.u32 (!%p3893_p3), %s4003_s21, 3 }
  0x3f   : > { %s4006_s18 = scalar_lea.vmem (!%p3893_p3), [#allocation3], %s2724_s22 }
  0x41   : > { %3737 = dma.done.wait (%p3932_p0), %s447_s5, 128  }
  0x42   : > { %3739 = vsyncadd (%p3932_p0), %s447_s5, 4294967168 }
  0x43   : > { %3741 = dma.done.wait (%p91_p1), [#allocation7], 10880  }
  0x44   : > { %3743 = vsyncadd (%p91_p1), [#allocation7], 4294956416 }
  0x45   : > { %3745 = dma.done.wait (%p91_p1), [#allocation10], 3072  }
  0x46   : > { %3747 = vsyncadd (%p91_p1), [#allocation10], 4294964224 }
  0x47   : > { %3749 = dma.done.wait (%p91_p1), [#allocation13], 1024  }
  0x48   : > { %3751 = vsyncadd (%p91_p1), [#allocation13], 4294966272  ;;  %s2730_s19 = sshll.u32 %s4003_s21, 7 }
  0x49   : > { %s4025_s28 = scalar_lea.vmem [#allocation14], %s2730_s19 }
  0x4a   : > { %3753 = dma.done.wait (%p3932_p0), %s447_s5, 2048  }
  0x4b   : > { %3755 = vsyncadd (%p3932_p0), %s447_s5, 4294965248  ;;  %p541_p3 = scmp.lt.s32.totalorder %s3774_s12, 1  ;;  %p562_p5 = scmp.eq.s32.totalorder %s3774_s12, 0 }
  0x4c   : > { %s4039_s11 = scalar_lea.vmem [#allocation15], %s2730_s19  ;;  %p2734_p1 = scmp.ne.s32.totalorder %s3774_s12, 0 }
  0x4d   : > { %s542_s20 = scalar_select %p541_p3, %s3774_s12, 1 }
  0x4e   : > { %565 = sbr.rel (%p2734_p1) target bundleno = 86 (0x56), region = 88 }
  0x4f   : > { %s3199_s3 = sshll.u32 %s542_s20, 3 }
  0x50   : > { %s4037_s14 = scalar_lea.vmem %s4716_s0, %s3199_s3 }
  0x53   : > { %vm566_vm0 = vcmask 7168   ;;  %v3799_v0 = vmov 0.0  }
  0x54   : > { %567 = vst.msk [vmem:[#allocation2] sm:$0xff] %vm566_vm0, %v3799_v0 }
  0x55   : > { %568 = vst.msk [vmem:[#allocation2 + $0x8] sm:$0xff] %vm566_vm0, %v3799_v0 }
  0x56 PF: > { %v2758_v1 = vld [vmem:[#allocation6 + $0x120] sm:$0xf]  ;;  %v3222_v2 = vld [vmem:[#allocation6 + $0x140] sm:$0xf0]  ;;  %v3227_v5 = vld [vmem:[#allocation6 + $0x144] sm:$0xf0] }
  0x57   : > { %v2779_v3 = vld [vmem:[#allocation6 + $0x124] sm:$0xf]  ;;  %v2759_v4 = vor.u32 %v3222_v2, %v2758_v1  ;;  %v2754_v6 = vld [vmem:[#allocation6 + $0xd8] sm:$0xf]  ;;  %v3221_v7 = vld [vmem:[#allocation6 + $0xf8] sm:$0xf0] }
  0x58   : > { %v2780_v8 = vor.u32 %v3227_v5, %v2779_v3  ;;  %v2775_v9 = vld [vmem:[#allocation6 + $0xdc] sm:$0xf]  ;;  %v3226_v10 = vld [vmem:[#allocation6 + $0xfc] sm:$0xf0]  ;;  %v2755_v11 = vor.u32 %v3221_v7, %v2754_v6  ;;  %v2750_v13 = vld [vmem:[#allocation6 + $0x90] sm:$0xf] }
  0x59   : > { %676 = vmatpush.bf16.msra.mxu0 %v2759_v4  ;;  %v2776_v12 = vor.u32 %v3226_v10, %v2775_v9  ;;  %v3220_v14 = vld [vmem:[#allocation6 + $0xb0] sm:$0xf0]  ;;  %v3225_v16 = vld [vmem:[#allocation6 + $0xb4] sm:$0xf0]  ;;  %v4042_v18 = vld [vmem:[#allocation9 + $0x78] sm:$0xff]  ;;  %vm669_vm1 = vcmask 654336  }
  0x5a   : > { %805 = vmatpush.bf16.msra.mxu2 %v2780_v8  ;;  %v2771_v15 = vld [vmem:[#allocation6 + $0x94] sm:$0xf]  ;;  %v2751_v17 = vor.u32 %v3220_v14, %v2750_v13  ;;  %v4044_v19 = vld [vmem:[#allocation9 + $0x70] sm:$0xff]  ;;  %v2746_v21 = vld [vmem:[#allocation6 + $0x48] sm:$0xf]  ;;  %697 = vmatpush.msra.mxu1 %v4042_v18  ;;  %s4753_s29 = sld [smem:[#allocation28_spill]] }
  0x5b   : > { %v2772_v20 = vor.u32 %v3225_v16, %v2771_v15  ;;  %v3219_v22 = vld [vmem:[#allocation6 + $0x68] sm:$0xf0]  ;;  %v3224_v24 = vld [vmem:[#allocation6 + $0x6c] sm:$0xf0]  ;;  %826 = vmatpush.msra.mxu3 %v4042_v18  ;;  %v2742_v29 = vld [vmem:[#allocation6] sm:$0xf] }
  0x5c   : > { %v2767_v23 = vld [vmem:[#allocation6 + $0x4c] sm:$0xf]  ;;  %v4048_v25 = vld [vmem:[#allocation9 + $0x68] sm:$0xff]  ;;  %698 = vmatpush.msra.mxu1 %v4044_v19  ;;  %v2747_v26 = vor.u32 %v3219_v22, %v2746_v21  ;;  %v3218_v30 = vld [vmem:[#allocation6 + $0x20] sm:$0xf0]  ;;  %s4377_s24 = sshll.u32 %s3774_s12, 10 }
  0x5d   : > { %677 = vmatpush.bf16.msra.mxu0 %v2755_v11  ;;  %827 = vmatpush.msra.mxu3 %v4044_v19  ;;  %v4052_v27 = vld [vmem:[#allocation9 + $0x60] sm:$0xff]  ;;  %v2768_v28 = vor.u32 %v3224_v24, %v2767_v23  ;;  %v2763_v31 = vld [vmem:[#allocation6 + $0x4] sm:$0xf]  ;;  %v2743_v34 = vor.u32 %v3218_v30, %v2742_v29  ;;  %v4060_v35 = vld [vmem:[#allocation9 + $0x50] sm:$0xff]  ;;  %s735_s9 = scalar_select %p562_p5, 1, 0 }
  0x5e   : > { %806 = vmatpush.bf16.msra.mxu2 %v2776_v12  ;;  %699 = vmatpush.msra.mxu1 %v4048_v25  ;;  %v3223_v32 = vld [vmem:[#allocation6 + $0x24] sm:$0xf0]  ;;  %v4056_v33 = vld [vmem:[#allocation9 + $0x58] sm:$0xff]  ;;  %v4064_v37 = vld [vmem:[#allocation9 + $0x48] sm:$0xff]  ;;  %s1565_s30 = sadd.s32 512, %s4377_s24  ;;  %s1771_s2 = sadd.s32 640, %s4377_s24 }
  0x5f   : > { %828 = vmatpush.msra.mxu3 %v4048_v25  ;;  %v2764_v36 = vor.u32 %v3223_v32, %v2763_v31  ;;  %v4067_v38 = vld [vmem:[%s4037_s14] sm:$0xff]  ;;  %v4071_v39 = vld [vmem:[#allocation9 + $0x40] sm:$0xff]  ;;  %v4083_v41 = vld [vmem:[#allocation9 + $0x30] sm:$0xff]  ;;  %s1977_s22 = sadd.s32 768, %s4377_s24  ;;  %vm2200_vm11 = vcmask 7168   ;;  %s2183_s5 = sadd.s32 896, %s4377_s24 }
  0x60   : > { %700 = vmatpush.msra.mxu1 %v4052_v27  ;;  %v4075_v40 = vld [vmem:[#allocation9 + $0x38] sm:$0xff]  ;;  %v4087_v42 = vld [vmem:[#allocation9 + $0x28] sm:$0xff]  ;;  %v4091_v43 = vld [vmem:[#allocation9 + $0x20] sm:$0xff]  ;;  %s3303_s19 = sshll.u32 %s3774_s12, 6  ;;  %s4754_s23 = sld [smem:[#allocation31_spill]] }
  0x61   : > { %678 = vmatpush.bf16.msra.mxu0 %v2751_v17  ;;  %829 = vmatpush.msra.mxu3 %v4052_v27  ;;  %v4095_v44 = vld [vmem:[#allocation9 + $0x18] sm:$0xff]  ;;  %v4099_v45 = vld [vmem:[#allocation9 + $0x10] sm:$0xff]  ;;  %v4103_v46 = vld [vmem:[#allocation9 + $0x8] sm:$0xff]  ;;  %s2498_s12 = scalar_lea.sflag [#allocation5], %s4003_s21 }
  0x62   : > { %807 = vmatpush.bf16.msra.mxu2 %v2772_v20  ;;  %701 = vmatpush.msra.mxu1 %v4056_v33  ;;  %v4109_v47 = vld [vmem:[#allocation9] sm:$0xff]  ;;  %v2885_v51 = vld [vmem:[#allocation6 + $0xe0] sm:$0xf]  ;;  %v3236_v52 = vld [vmem:[#allocation6 + $0x100] sm:$0xf0] }
  0x63   : > { %830 = vmatpush.msra.mxu3 %v4056_v33  ;;  %v2889_v48 = vld [vmem:[#allocation6 + $0x128] sm:$0xf]  ;;  %v3237_v49 = vld [vmem:[#allocation6 + $0x148] sm:$0xf0]  ;;  %v2886_v53 = vor.u32 %v3236_v52, %v2885_v51  ;;  %v2881_v54 = vld [vmem:[#allocation6 + $0x98] sm:$0xf] }
  0x64   : > { %702 = vmatpush.msra.mxu1 %v4060_v35  ;;  %v2890_v50 = vor.u32 %v3237_v49, %v2889_v48  ;;  %v3235_v55 = vld [vmem:[#allocation6 + $0xb8] sm:$0xf0]  ;;  %v2877_v57 = vld [vmem:[#allocation6 + $0x50] sm:$0xf]  ;;  %v3234_v58 = vld [vmem:[#allocation6 + $0x70] sm:$0xf0] }
  0x65   : > { %679 = vmatpush.bf16.msra.mxu0 %v2747_v26  ;;  %831 = vmatpush.msra.mxu3 %v4060_v35  ;;  %v2882_v56 = vor.u32 %v3235_v55, %v2881_v54  ;;  %v2878_v59 = vor.u32 %v3234_v58, %v2877_v57  ;;  %v2873_v60 = vld [vmem:[#allocation6 + $0x8] sm:$0xf]  ;;  %v3233_v61 = vld [vmem:[#allocation6 + $0x28] sm:$0xf0]  ;;  %v3247_v20 = vld [vmem:[#allocation6 + $0x14c] sm:$0xf0] }
  0x66   : > { %808 = vmatpush.bf16.msra.mxu2 %v2768_v28  ;;  %703 = vmatpush.msra.mxu1 %v4064_v37  ;;  %v2874_v62 = vor.u32 %v3233_v61, %v2873_v60  ;;  %v2910_v0 = vld [vmem:[#allocation8 + $0x104] sm:$0xf]  ;;  %v2927_v23 = vld [vmem:[#allocation6 + $0xe4] sm:$0xf]  ;;  %v3246_v24 = vld [vmem:[#allocation6 + $0x104] sm:$0xf0]  ;;  %s2512_s15 = scalar_lea.hbm %s4754_s23, %s3303_s19 }
  0x67   : > { %832 = vmatpush.msra.mxu3 %v4064_v37  ;;  %v3242_v1 = vld [vmem:[#allocation8 + $0x120] sm:$0xf0]  ;;  %v2928_v26 = vor.u32 %v3246_v24, %v2927_v23  ;;  %v2923_v28 = vld [vmem:[#allocation6 + $0x9c] sm:$0xf]  ;;  %v3245_v29 = vld [vmem:[#allocation6 + $0xbc] sm:$0xf0] }
  0x68   : > { %704 = vmatpush.msra.mxu1 %v4071_v39  ;;  %v2911_v2 = vor.u32 %v3242_v1, %v2910_v0  ;;  %v2906_v4 = vld [vmem:[#allocation8 + $0xc4] sm:$0xf]  ;;  %v2924_v30 = vor.u32 %v3245_v29, %v2923_v28  ;;  %v2919_v31 = vld [vmem:[#allocation6 + $0x54] sm:$0xf]  ;;  %v3244_v32 = vld [vmem:[#allocation6 + $0x74] sm:$0xf0] }
  0x69   : > { %680 = vmatpush.bf16.msra.mxu0 %v2743_v34  ;;  %833 = vmatpush.msra.mxu3 %v4071_v39  ;;  %v3241_v5 = vld [vmem:[#allocation8 + $0xe0] sm:$0xf0]  ;;  %v2920_v34 = vor.u32 %v3244_v32, %v2919_v31  ;;  %v3243_v49 = vld [vmem:[#allocation6 + $0x2c] sm:$0xf0]  ;;  %v622_v24 = vld [vmem:[#allocation2] sm:$0xff]  ;;  %s2515_s25 = sshll.u32 %s2512_s15, 4  ;;  %s2516_s25 = int_to_ptr.hbm [resolvable:$true] %s2515_s25 }
  0x6a   : > { %809 = vmatpush.bf16.msra.mxu2 %v2764_v36  ;;  %705 = vmatpush.msra.mxu1 %v4075_v40  ;;  %v2907_v7 = vor.u32 %v3241_v5, %v2906_v4  ;;  %v2902_v8 = vld [vmem:[#allocation8 + $0x84] sm:$0xf]  ;;  %v4132_v36 = vld [vmem:[%s4006_s18] sm:$0xff]  ;;  %s3698_s27 = sshra.s32 %s2516_s25, 4  ;;  %s3699_s27 = int_to_ptr.hbm [resolvable:$true] %s3698_s27 }
  0x6b   : > { %834 = vmatpush.msra.mxu3 %v4075_v40  ;;  %v3240_v9 = vld [vmem:[#allocation8 + $0xa0] sm:$0xf0]  ;;  %v3252_v51 = vld [vmem:[#allocation8 + $0x124] sm:$0xf0]  ;;  %v3257_v4 = vld [vmem:[#allocation6 + $0x150] sm:$0xf0]  ;;  %p3705_p13 = scmp.lt.s32.totalorder %s3699_s27, %s4754_s23 }
  0x6c   : > { %2760 = vmatmul.msk.bf16.vlgmr.msra.gmra.mxu0 %vm669_vm1, %v4067_v38  ;;  %706 = vmatpush.msra.mxu1 %v4083_v41  ;;  %v2903_v10 = vor.u32 %v3240_v9, %v2902_v8  ;;  %v2898_v12 = vld [vmem:[#allocation8 + $0x44] sm:$0xf]  ;;  %v2948_v54 = vld [vmem:[#allocation8 + $0xc8] sm:$0xf]  ;;  %v2969_v8 = vld [vmem:[#allocation6 + $0xe8] sm:$0xf] }
  0x6d   : > { %2781 = vmatmul.msk.bf16.vlgmr.msra.gmra.mxu2 %vm669_vm1, %v4067_v38  ;;  %835 = vmatpush.msra.mxu3 %v4083_v41  ;;  %v3239_v13 = vld [vmem:[#allocation8 + $0x60] sm:$0xf0]  ;;  %v3251_v55 = vld [vmem:[#allocation8 + $0xe4] sm:$0xf0]  ;;  %s3700_s16 = scalar_lea.hbm %s3699_s27, 128 }
  0x6e   : > { %707 = vmatpush.msra.mxu1 %v4087_v42  ;;  %v2899_v14 = vor.u32 %v3239_v13, %v2898_v12  ;;  %v2894_v15 = vld [vmem:[#allocation8 + $0x4] sm:$0xf]  ;;  %v2944_v57 = vld [vmem:[#allocation8 + $0x88] sm:$0xf]  ;;  %v3800_v12 = vmov 0   ;;  %p3701_p10 = scmp.ne.s32.totalorder %s3699_s27, %s3700_s16 }
  0x6f   : > { %836 = vmatpush.msra.mxu3 %v4087_v42  ;;  %v3238_v16 = vld [vmem:[#allocation8 + $0x20] sm:$0xf0]  ;;  %v3250_v58 = vld [vmem:[#allocation8 + $0xa4] sm:$0xf0]  ;;  %3437 = vset.pattern.permute.xlu1 %v3800_v12  ;;  %v2965_v13 = vld [vmem:[#allocation6 + $0xa0] sm:$0xf] }
  0x70   : > { %708 = vmatpush.msra.mxu1 %v4091_v43  ;;  %v2931_v17 = vld [vmem:[#allocation6 + $0x12c] sm:$0xf]  ;;  %v2895_v21 = vor.u32 %v3238_v16, %v2894_v15  ;;  %v2940_v60 = vld [vmem:[#allocation8 + $0x48] sm:$0xf]  ;;  %3438 = vset.pattern.permute.xlu2 %v3800_v12  ;;  %v2961_v16 = vld [vmem:[#allocation6 + $0x58] sm:$0xf]  ;;  %p3702_p11 = pnand %p3701_p10, %p3936_p2 }
  0x71   : > { %837 = vmatpush.msra.mxu3 %v4091_v43  ;;  %v2932_v22 = vor.u32 %v3247_v20, %v2931_v17  ;;  %v2915_v48 = vld [vmem:[#allocation6 + $0xc] sm:$0xf]  ;;  %v3249_v61 = vld [vmem:[#allocation8 + $0x64] sm:$0xf0]  ;;  %3439 = vset.pattern.permute.xlu0 %v3800_v12  ;;  %v3254_v17 = vld [vmem:[#allocation6 + $0x78] sm:$0xf0] }
  0x72   : > { %709 = vmatpush.msra.mxu1 %v4095_v44  ;;  %v2916_v52 = vor.u32 %v3243_v49, %v2915_v48  ;;  %v2936_v0 = vld [vmem:[#allocation8 + $0x8] sm:$0xf]  ;;  %v3256_v9 = vld [vmem:[#allocation6 + $0x108] sm:$0xf0]  ;;  %v2962_v20 = vor.u32 %v3254_v17, %v2961_v16  ;;  %p3703_p12 = pneg %p3702_p11 }
  0x73   : > { %838 = vmatpush.msra.mxu3 %v4095_v44  ;;  %v3248_v1 = vld [vmem:[#allocation8 + $0x24] sm:$0xf0]  ;;  %v4142_v29 = vld [vmem:[#allocation2 + $0x8] sm:$0xff] }
  0x74   : > { %710 = vmatpush.msra.mxu1 %v4099_v45  ;;  %v2937_v5 = vor.u32 %v3248_v1, %v2936_v0 }
  0x75   : > { %839 = vmatpush.msra.mxu3 %v4099_v45 }
  0x76   : > { %711 = vmatpush.msra.mxu1 %v4103_v46 }
  0x77   : > { %840 = vmatpush.msra.mxu3 %v4103_v46 }
  0x78   : > { %712 = vmatpush.msra.mxu1 %v4109_v47 }
  0x79   : > { %841 = vmatpush.msra.mxu3 %v4109_v47 }
  0x7b   : > { %1109 = vmatpush.bf16.msrb.mxu3 %v2890_v50  ;;  %v2952_v50 = vld [vmem:[#allocation8 + $0x108] sm:$0xf] }
  0x7f   : > { %1110 = vmatpush.bf16.msrb.mxu3 %v2886_v53  ;;  %v2953_v53 = vor.u32 %v3252_v51, %v2952_v50  ;;  %v4151_v51 = vld [vmem:[#allocation12 + $0x38] sm:$0xff] }
  0x80   : > { %916 = vmatpush.bf16.msrb.mxu0 %v4151_v51 }
  0x83   : > { %1111 = vmatpush.bf16.msrb.mxu3 %v2882_v56  ;;  %v2949_v56 = vor.u32 %v3251_v55, %v2948_v54  ;;  %v4159_v54 = vld [vmem:[#allocation12 + $0x28] sm:$0xff]  ;;  %v4163_v55 = vld [vmem:[#allocation12 + $0x20] sm:$0xff] }
  0x87   : > { %1112 = vmatpush.bf16.msrb.mxu3 %v2878_v59  ;;  %v2945_v59 = vor.u32 %v3250_v58, %v2944_v57  ;;  %v4168_v57 = vld [vmem:[#allocation12 + $0x18] sm:$0xff]  ;;  %v4171_v58 = vld [vmem:[#allocation12 + $0x10] sm:$0xff] }
  0x8b   : > { %1113 = vmatpush.bf16.msrb.mxu3 %v2874_v62  ;;  %v2941_v62 = vor.u32 %v3249_v61, %v2940_v60  ;;  %v4176_v60 = vld [vmem:[#allocation12 + $0x8] sm:$0xff]  ;;  %v4179_v61 = vld [vmem:[#allocation12] sm:$0xff] }
  0xe9   : > { %v4113_v63 = vpop.f32.mrf.mxu0 }
  0xea   : > { %756 = vadd.xlane.f32.xlu0 %v4113_v63  ;;  %713 = vmatmul.f32.vlgmr.msra.gmra.mxu1 %v4113_v63 }
  0xf0   : > { %v4117_v3 = vpop.f32.mrf.mxu2 }
  0xf1   : > { %862 = vadd.xlane.f32.xlu2 %v4117_v3  ;;  %842 = vmatmul.f32.vlgmr.msra.gmra.mxu3 %v4117_v3  ;;  %v4121_v6 = vpop.f32.mrf.mxu0 }
  0xf2   : > { %758 = vadd.xlane.f32.xlu0 %v4121_v6  ;;  %716 = vmatmul.f32.gmra.mxu1 %v4121_v6 }
  0xf3   : > { %1243 = vmatpush.bf16.msra.mxu3 %v2911_v2  ;;  %v2973_v2 = vld [vmem:[#allocation6 + $0x130] sm:$0xf] }
  0xf7   : > { %1244 = vmatpush.bf16.msra.mxu3 %v2907_v7  ;;  %v2974_v7 = vor.u32 %v3257_v4, %v2973_v2  ;;  %v739_v4 = vld [vmem:[%s4753_s29] sm:$0xff] }
  0xf8   : > { %v4125_v11 = vpop.f32.mrf.mxu2 }
  0xf9   : > { %864 = vadd.xlane.f32.xlu2 %v4125_v11  ;;  %845 = vmatmul.f32.gmra.mxu3 %v4125_v11 }
  0xfb   : > { %1245 = vmatpush.bf16.msra.mxu3 %v2903_v10  ;;  %v2970_v10 = vor.u32 %v3256_v9, %v2969_v8 }
  0xff   : > { %1246 = vmatpush.bf16.msra.mxu3 %v2899_v14  ;;  %v3255_v14 = vld [vmem:[#allocation6 + $0xc0] sm:$0xf0] }
 0x100   : > { %v2966_v15 = vor.u32 %v3255_v14, %v2965_v13 }
 0x101   : > { %2891 = vmatmul.msk.bf16.vlgmr.msrb.gmra.mxu3 %vm669_vm1, %v4067_v38 }
 0x103   : > { %1247 = vmatpush.bf16.msra.mxu3 %v2895_v21  ;;  %v2957_v21 = vld [vmem:[#allocation6 + $0x10] sm:$0xf] }
 0x107   : > { %1309 = vmatpush.bf16.msrb.mxu3 %v2932_v22  ;;  %v3253_v22 = vld [vmem:[#allocation6 + $0x30] sm:$0xf0] }
 0x108   : > { %v2958_v23 = vor.u32 %v3253_v22, %v2957_v21 }
 0x10b   : > { %1310 = vmatpush.bf16.msrb.mxu3 %v2928_v26 }
 0x10f   : > { %1311 = vmatpush.bf16.msrb.mxu3 %v2924_v30 }
 0x111   : > { %2912 = vmatmul.msk.bf16.vlgmr.msra.gmra.mxu3 %vm669_vm1, %v4132_v36 }
 0x113   : > { %1312 = vmatpush.bf16.msrb.mxu3 %v2920_v34 }
 0x117   : > { %1313 = vmatpush.bf16.msrb.mxu3 %v2916_v52 }
 0x11b   : > { %1443 = vmatpush.bf16.msra.mxu3 %v2953_v53  ;;  %v4156_v53 = vld [vmem:[#allocation12 + $0x30] sm:$0xff] }
 0x11c   : > { %917 = vmatpush.bf16.msrb.mxu0 %v4156_v53 }
 0x11f   : > { %1444 = vmatpush.bf16.msra.mxu3 %v2949_v56 }
 0x120   : > { %918 = vmatpush.bf16.msrb.mxu0 %v4159_v54 }
 0x121   : > { %2933 = vmatmul.msk.bf16.vlgmr.msrb.gmra.mxu3 %vm669_vm1, %v4067_v38 }
 0x123   : > { %1445 = vmatpush.bf16.msra.mxu3 %v2945_v59 }
 0x124   : > { %919 = vmatpush.bf16.msrb.mxu0 %v4163_v55 }
 0x127   : > { %1446 = vmatpush.bf16.msra.mxu3 %v2941_v62 }
 0x128   : > { %920 = vmatpush.bf16.msrb.mxu0 %v4168_v57 }
 0x12b   : > { %1447 = vmatpush.bf16.msra.mxu3 %v2937_v5 }
 0x12c   : > { %921 = vmatpush.bf16.msrb.mxu0 %v4171_v58 }
 0x12f   : > { %1509 = vmatpush.bf16.msrb.mxu3 %v2974_v7 }
 0x130   : > { %922 = vmatpush.bf16.msrb.mxu0 %v4176_v60 }
 0x131   : > { %2954 = vmatmul.msk.bf16.vlgmr.msra.gmra.mxu3 %vm669_vm1, %v4132_v36 }
 0x133   : > { %1510 = vmatpush.bf16.msrb.mxu3 %v2970_v10 }
 0x134   : > { %923 = vmatpush.bf16.msrb.mxu0 %v4179_v61 }
 0x137   : > { %1511 = vmatpush.bf16.msrb.mxu3 %v2966_v15 }
 0x138   : > { %1130 = vmatpush.msra.mxu0 %v4042_v18 }
 0x13a   : > { %1131 = vmatpush.msra.mxu0 %v4044_v19 }
 0x13b   : > { %1512 = vmatpush.bf16.msrb.mxu3 %v2962_v20 }
 0x13c   : > { %1132 = vmatpush.msra.mxu0 %v4048_v25 }
 0x13e   : > { %1133 = vmatpush.msra.mxu0 %v4052_v27 }
 0x13f   : > { %1513 = vmatpush.bf16.msrb.mxu3 %v2958_v23 }
 0x140   : > { %1134 = vmatpush.msra.mxu0 %v4056_v33 }
 0x142   : > { %2975 = vmatmul.msk.bf16.vlgmr.msrb.gmra.mxu3 %vm669_vm1, %v4067_v38  ;;  %1135 = vmatpush.msra.mxu0 %v4060_v35 }
 0x144   : > { %1136 = vmatpush.msra.mxu0 %v4064_v37 }
 0x146   : > { %1137 = vmatpush.msra.mxu0 %v4071_v39 }
 0x148   : > { %1138 = vmatpush.msra.mxu0 %v4075_v40 }
 0x14a   : > { %1139 = vmatpush.msra.mxu0 %v4083_v41 }
 0x14c   : > { %1140 = vmatpush.msra.mxu0 %v4087_v42 }
 0x14e   : > { %1141 = vmatpush.msra.mxu0 %v4091_v43 }
 0x150   : > { %1142 = vmatpush.msra.mxu0 %v4095_v44 }
 0x152   : > { %1143 = vmatpush.msra.mxu0 %v4099_v45 }
 0x154   : > { %1144 = vmatpush.msra.mxu0 %v4103_v46 }
 0x156   : > { %1145 = vmatpush.msra.mxu0 %v4109_v47 }
 0x15d   : > { %v757_v26 = vpop.xlane.xlu0 %756 }
 0x15e   : > { %v760_v28 = vadd.f32 %v757_v26, %v622_v24 }
 0x160   : > { %818 = vperm.xlu1 %3437, %v760_v28  }
 0x164   : > { %v863_v30 = vpop.xlane.xlu2 %862 }
 0x165   : > { %v4144_v31 = vadd.f32 %v863_v30, %v760_v28  ;;  %v759_v32 = vpop.xlane.xlu0 %758 }
 0x166   : > { %v761_v34 = vadd.f32 %v759_v32, %v4142_v29 }
 0x167   : > { %1122 = vperm.xlu2 %3438, %v4144_v31  }
 0x168   : > { %823 = vperm.xlu1 %3437, %v761_v34  }
 0x16c   : > { %v865_v1 = vpop.xlane.xlu2 %864 }
 0x16d   : > { %v867_v2 = vadd.f32 %v865_v1, %v761_v34  ;;  %v3231_v1 = vld [vmem:[#allocation8 + $0xdc] sm:$0xf0] }
 0x174   : > { %v843_v48 = vpop.f32.mrf.mxu3 }
 0x17c   : > { %v846_v49 = vpop.f32.mrf.mxu3 }
 0x184   : > { %v4148_v50 = vpop.f32.mrf.mxu3 }
 0x185   : > { %1166 = vadd.xlane.f32.xlu0 %v4148_v50 }
 0x18c   : > { %v4154_v52 = vpop.f32.mrf.mxu3 }
 0x192   : > { %1168 = vadd.xlane.f32.xlu1 %v4154_v52 }
 0x194   : > { %v4165_v56 = vpop.f32.mrf.mxu3 }
 0x19c   : > { %v4173_v59 = vpop.f32.mrf.mxu3 }
 0x1a4   : > { %v4181_v62 = vpop.f32.mrf.mxu3 }
 0x1a5   : > { %1366 = vadd.xlane.f32.xlu2 %v4181_v62 }
 0x1ac   : > { %v4187_v0 = vpop.f32.mrf.mxu3 }
 0x1ad   : > { %1368 = vadd.xlane.f32.xlu0 %v4187_v0 }
 0x1b4   : > { %v4208_v10 = vpop.f32.mrf.mxu3 }
 0x1bc   : > { %v4211_v28 = vpop.f32.mrf.mxu3 }
 0x1c1   : > { %1127 = vperm.xlu0 %3439, %v867_v2  }
 0x1c9   : > { %689 = vperm.xlu0 %3439, %v622_v24  }
 0x1d1   : > { %743 = vperm.xlu0 %3439, %v739_v4   ;;  %v3266_v4 = vld [vmem:[#allocation6 + $0x10c] sm:$0xf0] }
 0x1d2   : > { %v819_v5 = vpop.permute.xlu1 %818 }
 0x1d3   : > { %v844_v7 = vadd.f32 %v843_v48, %v819_v5  ;;  %v3230_v5 = vld [vmem:[#allocation8 + $0x9c] sm:$0xf0] }
 0x1d5   : > { %v853_v8 = vsub.f32 %v844_v7, %v4117_v3  ;;  %v849_v14 = vfloor.f32 %v844_v7  ;;  %v4220_v3 = vpop.f32.mrf.mxu3 }
 0x1d7   : > { %v855_v12 = vfloor.f32 %v853_v8  ;;  %v851_v21 = vsub.f32 %v844_v7, %v849_v14  ;;  %v2856_v7 = vld [vmem:[#allocation8 + $0x40] sm:$0xf] }
 0x1d8   : > { %v2852_v14 = vld [vmem:[#allocation8] sm:$0xf] }
 0x1d9   : > { %v857_v17 = vsub.f32 %v853_v8, %v855_v12  ;;  %v3010_v12 = vld [vmem:[#allocation6 + $0xa4] sm:$0xf] }
 0x1da   : > { %v824_v9 = vpop.permute.xlu1 %823 }
 0x1db   : > { %v847_v13 = vadd.f32 %v846_v49, %v824_v9  ;;  %v859_v24 = vsub.f32 %v851_v21, %v857_v17  ;;  %v4246_v49 = vpop.permute.xlu2 %1122  ;;  %v3229_v9 = vld [vmem:[#allocation8 + $0x5c] sm:$0xf0]  ;;  %v3264_v17 = vld [vmem:[#allocation6 + $0x7c] sm:$0xf0] }
 0x1dd   : > { %v850_v15 = vfloor.f32 %v847_v13  ;;  %v854_v16 = vsub.f32 %v847_v13, %v4125_v11  ;;  %v4228_v32 = vpop.f32.mrf.mxu3 }
 0x1df   : > { %v856_v20 = vfloor.f32 %v854_v16  ;;  %v852_v22 = vsub.f32 %v847_v13, %v850_v15  ;;  %v3265_v13 = vld [vmem:[#allocation6 + $0xc4] sm:$0xf0] }
 0x1e0   : > { %v3228_v15 = vld [vmem:[#allocation8 + $0x1c] sm:$0xf0] }
 0x1e1   : > { %v858_v23 = vsub.f32 %v854_v16, %v856_v20  ;;  %v3011_v16 = vor.u32 %v3265_v13, %v3010_v12  ;;  %v2853_v20 = vor.u32 %v3228_v15, %v2852_v14  ;;  %v3258_v14 = vld [vmem:[#allocation8 + $0x28] sm:$0xf0] }
 0x1e3   : > { %v860_v26 = vsub.f32 %v852_v22, %v858_v23  ;;  %v740_v22 = vld [vmem:[%s4753_s29 + $0x8] sm:$0xff]  ;;  %v3002_v23 = vld [vmem:[#allocation6 + $0x14] sm:$0xf] }
 0x1e5   : > { %v4213_v30 = vpack.c.bf16 %v860_v26, %v859_v24  ;;  %v3263_v24 = vld [vmem:[#allocation6 + $0x34] sm:$0xf0]  ;;  %v4276_v26 = vld [vmem:[#allocation11 + $0x38] sm:$0xff] }
 0x1e6   : > { %978 = vmatpush.bf16.msrb.mxu2 %v4276_v26 }
 0x1e7   : > { %924 = vmatmul.bf16.vlgmr.msrb.gmra.mxu0 %v4213_v30 }
 0x1e8   : > { %1330 = vmatpush.msrb.mxu0 %v4042_v18 }
 0x1ea   : > { %1331 = vmatpush.msrb.mxu0 %v4044_v19 }
 0x1ec   : > { %1332 = vmatpush.msrb.mxu0 %v4048_v25 }
 0x1ee   : > { %1333 = vmatpush.msrb.mxu0 %v4052_v27 }
 0x1f0   : > { %1334 = vmatpush.msrb.mxu0 %v4056_v33 }
 0x1f2   : > { %1335 = vmatpush.msrb.mxu0 %v4060_v35 }
 0x1f4   : > { %1336 = vmatpush.msrb.mxu0 %v4064_v37 }
 0x1f6   : > { %1337 = vmatpush.msrb.mxu0 %v4071_v39 }
 0x1f7   : > { %1146 = vmatmul.f32.vlgmr.msra.gmra.mxu0 %v4148_v50 }
 0x1f8   : > { %1338 = vmatpush.msrb.mxu0 %v4075_v40  ;;  %v1167_v11 = vpop.xlane.xlu0 %1166 }
 0x1f9   : > { %v1170_v34 = vadd.f32 %v1167_v11, %v4144_v31  ;;  %v4279_v11 = vld [vmem:[#allocation11 + $0x30] sm:$0xff] }
 0x1fa   : > { %1339 = vmatpush.msrb.mxu0 %v4083_v41  ;;  %979 = vmatpush.bf16.msrb.mxu2 %v4279_v11 }
 0x1fb   : > { %1574 = vadd.xlane.f32.xlu0 %v4228_v32  ;;  %1322 = vperm.xlu2 %3438, %v1170_v34  }
 0x1fc   : > { %1340 = vmatpush.msrb.mxu0 %v4087_v42 }
 0x1fe   : > { %1341 = vmatpush.msrb.mxu0 %v4091_v43 }
 0x1ff   : > { %1149 = vmatmul.f32.gmra.mxu0 %v4154_v52 }
 0x200   : > { %1342 = vmatpush.msrb.mxu0 %v4095_v44 }
 0x202   : > { %1343 = vmatpush.msrb.mxu0 %v4099_v45 }
 0x204   : > { %1344 = vmatpush.msrb.mxu0 %v4103_v46 }
 0x205   : > { %v1169_v48 = vpop.xlane.xlu1 %1168 }
 0x206   : > { %1345 = vmatpush.msrb.mxu0 %v4109_v47  ;;  %v1171_v31 = vadd.f32 %v1169_v48, %v867_v2  ;;  %v4290_v48 = vld [vmem:[#allocation11 + $0x20] sm:$0xff] }
 0x207   : > { %1346 = vmatmul.f32.vlgmr.msrb.gmra.mxu0 %v4181_v62 }
 0x208   : > { %1530 = vmatpush.msra.mxu0 %v4042_v18  ;;  %1327 = vperm.xlu2 %3438, %v1171_v31  }
 0x20a   : > { %1531 = vmatpush.msra.mxu0 %v4044_v19 }
 0x20c   : > { %1532 = vmatpush.msra.mxu0 %v4048_v25  ;;  %v2868_v25 = vld [vmem:[#allocation8 + $0x100] sm:$0xf] }
 0x20e   : > { %1533 = vmatpush.msra.mxu0 %v4052_v27  ;;  %v3232_v27 = vld [vmem:[#allocation8 + $0x11c] sm:$0xf0] }
 0x20f   : > { %1349 = vmatmul.f32.gmra.mxu0 %v4187_v0 }
 0x210   : > { %1534 = vmatpush.msra.mxu0 %v4056_v33  ;;  %v2869_v33 = vor.u32 %v3232_v27, %v2868_v25  ;;  %v4308_v25 = vld [vmem:[#allocation11] sm:$0xff] }
 0x212   : > { %1535 = vmatpush.msra.mxu0 %v4060_v35  ;;  %v3018_v35 = vld [vmem:[#allocation6 + $0x134] sm:$0xf]  ;;  %1043 = vmatpush.bf16.msrb.mxu1 %v2869_v33 }
 0x213   : > { %v2997_v33 = vld [vmem:[#allocation8 + $0x10c] sm:$0xf] }
 0x214   : > { %1536 = vmatpush.msra.mxu0 %v4064_v37 }
 0x216   : > { %1537 = vmatpush.msra.mxu0 %v4071_v39  ;;  %v3267_v39 = vld [vmem:[#allocation6 + $0x154] sm:$0xf0] }
 0x218   : > { %1538 = vmatpush.msra.mxu0 %v4075_v40  ;;  %v1367_v18 = vpop.xlane.xlu2 %1366  ;;  %v2864_v40 = vld [vmem:[#allocation8 + $0xc0] sm:$0xf] }
 0x219   : > { %v4253_v19 = vadd.f32 %v1367_v18, %v1170_v34  ;;  %v4285_v34 = vld [vmem:[#allocation11 + $0x28] sm:$0xff] }
 0x21a   : > { %1539 = vmatpush.msra.mxu0 %v4083_v41  ;;  %v2865_v41 = vor.u32 %v3231_v1, %v2864_v40  ;;  %980 = vmatpush.bf16.msrb.mxu2 %v4285_v34  ;;  %v4304_v18 = vld [vmem:[#allocation11 + $0x8] sm:$0xff] }
 0x21b   : > { %1522 = vperm.xlu1 %3437, %v4253_v19   ;;  %v3261_v40 = vld [vmem:[#allocation8 + $0xe8] sm:$0xf0] }
 0x21c   : > { %1540 = vmatpush.msra.mxu0 %v4087_v42  ;;  %v3019_v42 = vor.u32 %v3267_v39, %v3018_v35  ;;  %1044 = vmatpush.bf16.msrb.mxu1 %v2865_v41  ;;  %v3262_v35 = vld [vmem:[#allocation8 + $0x128] sm:$0xf0] }
 0x21d   : > { %v2993_v39 = vld [vmem:[#allocation8 + $0xcc] sm:$0xf] }
 0x21e   : > { %1541 = vmatpush.msra.mxu0 %v4091_v43  ;;  %v3014_v43 = vld [vmem:[#allocation6 + $0xec] sm:$0xf]  ;;  %981 = vmatpush.bf16.msrb.mxu2 %v4290_v48  ;;  %v2994_v1 = vor.u32 %v3261_v40, %v2993_v39 }
 0x220   : > { %1542 = vmatpush.msra.mxu0 %v4095_v44  ;;  %v1369_v37 = vpop.xlane.xlu0 %1368  ;;  %v2860_v44 = vld [vmem:[#allocation8 + $0x80] sm:$0xf] }
 0x221   : > { %v4260_v2 = vadd.f32 %v1369_v37, %v1171_v31  ;;  %v2861_v8 = vor.u32 %v3230_v5, %v2860_v44  ;;  %v4295_v31 = vld [vmem:[#allocation11 + $0x18] sm:$0xff]  ;;  %v2998_v37 = vor.u32 %v3262_v35, %v2997_v33 }
 0x222   : > { %1543 = vmatpush.msra.mxu0 %v4099_v45  ;;  %v3015_v45 = vor.u32 %v3266_v4, %v3014_v43  ;;  %982 = vmatpush.bf16.msrb.mxu2 %v4295_v31  ;;  %v2989_v43 = vld [vmem:[#allocation8 + $0x8c] sm:$0xf] }
 0x223   : > { %1527 = vperm.xlu2 %3438, %v4260_v2   ;;  %1045 = vmatpush.bf16.msrb.mxu1 %v2861_v8  ;;  %v3260_v4 = vld [vmem:[#allocation8 + $0xa8] sm:$0xf0] }
 0x224   : > { %1544 = vmatpush.msra.mxu0 %v4103_v46  ;;  %v2857_v46 = vor.u32 %v3229_v9, %v2856_v7  ;;  %1649 = vmatpush.bf16.msra.mxu3 %v2998_v37  ;;  %v2990_v44 = vor.u32 %v3260_v4, %v2989_v43  ;;  %v2985_v7 = vld [vmem:[#allocation8 + $0x4c] sm:$0xf]  ;;  %v732_v43 = vlaneseq }
 0x225   : > { %v3259_v8 = vld [vmem:[#allocation8 + $0x68] sm:$0xf0] }
 0x226   : > { %1545 = vmatpush.msra.mxu0 %v4109_v47  ;;  %v3006_v47 = vld [vmem:[#allocation6 + $0x5c] sm:$0xf] }
 0x227   : > { %1546 = vmatmul.f32.vlgmr.msra.gmra.mxu0 %v4220_v3  ;;  %1046 = vmatpush.bf16.msrb.mxu1 %v2857_v46  ;;  %v3007_v21 = vor.u32 %v3264_v17, %v3006_v47  ;;  %v2981_v46 = vld [vmem:[#allocation8 + $0xc] sm:$0xf]  ;;  %v714_v47 = vpop.f32.mrf.mxu1 }
 0x228   : > { %1715 = vmatpush.bf16.msrb.mxu0 %v3019_v42  ;;  %1650 = vmatpush.bf16.msra.mxu3 %v2994_v1  ;;  %v2982_v15 = vor.u32 %v3258_v14, %v2981_v46  ;;  %v4344_v46 = vand.u32 127, %v732_v43 }
 0x22a   : > { %vm734_vm2 = vcmp.eq.s32.totalorder %v4344_v46, 0 }
 0x22b   : > { %694 = vperm.xlu2 %3438, %v4142_v29   ;;  %1047 = vmatpush.bf16.msrb.mxu1 %v2853_v20  ;;  %v3003_v29 = vor.u32 %v3263_v24, %v3002_v23 }
 0x22c   : > { %1716 = vmatpush.bf16.msrb.mxu0 %v3015_v45  ;;  %1651 = vmatpush.bf16.msra.mxu3 %v2990_v44  ;;  %v2986_v45 = vor.u32 %v3259_v8, %v2985_v7 }
 0x22e   : > { %2870 = vmatmul.msk.bf16.vlgmr.msrb.gmra.mxu1 %vm669_vm1, %v4132_v36 }
 0x22f   : > { %1549 = vmatmul.f32.gmra.mxu0 %v4228_v32  ;;  %1172 = vmatpush.bf16.msra.mxu1 %v4151_v51  ;;  %v717_v4 = vpop.f32.mrf.mxu1 }
 0x230   : > { %1717 = vmatpush.bf16.msrb.mxu0 %v3011_v16  ;;  %1652 = vmatpush.bf16.msra.mxu3 %v2986_v45 }
 0x233   : > { %748 = vperm.xlu2 %3438, %v740_v22   ;;  %1173 = vmatpush.bf16.msra.mxu1 %v4156_v53  ;;  %v1128_v5 = vpop.permute.xlu0 %1127 }
 0x234   : > { %1718 = vmatpush.bf16.msrb.mxu0 %v3007_v21  ;;  %1653 = vmatpush.bf16.msra.mxu3 %v2982_v15  ;;  %v736_v15 = vstv %s735_s9  ;;  %s3704_s9 = scalar_lea.hbm %s4754_s23, 256 }
 0x235   : > { %vm737_vm3 = vcmp.eq.s32.totalorder %v736_v15, 1  ;;  %v4381_v15 = vld [vmem:[#allocation9 + $0x78] sm:$0xff]  ;;  %p3706_p0 = scmp.lt.s32.totalorder %s3704_s9, %s3700_s16 }
 0x236   : > { %vm738_vm4 = vmand %vm734_vm2, %vm737_vm3 }
 0x237   : > { %1174 = vmatpush.bf16.msra.mxu1 %v4159_v54  ;;  %2999 = vmatmul.msk.bf16.vlgmr.msra.gmra.mxu3 %vm669_vm1, %v4132_v36  ;;  %p3707_p4 = por %p3706_p0, %p3705_p13 }
 0x238   : > { %1719 = vmatpush.bf16.msrb.mxu0 %v3003_v29  ;;  %1798 = vmatpush.bf16.msrb.mxu3 %v4276_v26 }
 0x239   : > { %p3708_p9 = pnand %p3707_p4, %p3703_p12 }
 0x23b   : > { %3020 = vmatmul.msk.bf16.vlgmr.msrb.gmra.mxu0 %vm669_vm1, %v4067_v38  ;;  %1175 = vmatpush.bf16.msra.mxu1 %v4163_v55  ;;  %v4299_v38 = vld [vmem:[#allocation11 + $0x10] sm:$0xff]  ;;  %v690_v17 = vpop.permute.xlu0 %689 }
 0x23c   : > { %983 = vmatpush.bf16.msrb.mxu2 %v4299_v38  ;;  %v715_v21 = vadd.f32 %v714_v47, %v690_v17  ;;  %1799 = vmatpush.bf16.msrb.mxu3 %v4279_v11 }
 0x23e   : > { %v720_v45 = vfloor.f32 %v715_v21 }
 0x23f   : > { %1176 = vmatpush.bf16.msra.mxu1 %v4168_v57 }
 0x240   : > { %984 = vmatpush.bf16.msrb.mxu2 %v4304_v18  ;;  %1800 = vmatpush.bf16.msrb.mxu3 %v4285_v34 }
 0x243   : > { %1177 = vmatpush.bf16.msra.mxu1 %v4171_v58  ;;  %v744_v47 = vpop.permute.xlu0 %743 }
 0x244   : > { %985 = vmatpush.bf16.msrb.mxu2 %v4308_v25  ;;  %1801 = vmatpush.bf16.msrb.mxu3 %v4290_v48 }
 0x245   : > { %1572 = vadd.xlane.f32.xlu1 %v4220_v3 }
 0x247   : > { %1178 = vmatpush.bf16.msra.mxu1 %v4176_v60 }
 0x248   : > { %1186 = vmatpush.bf16.msra.mxu2 %v4276_v26  ;;  %1802 = vmatpush.bf16.msrb.mxu3 %v4295_v31 }
 0x24b   : > { %1179 = vmatpush.bf16.msra.mxu1 %v4179_v61 }
 0x24c   : > { %1187 = vmatpush.bf16.msra.mxu2 %v4279_v11  ;;  %1803 = vmatpush.bf16.msrb.mxu3 %v4299_v38 }
 0x24f   : > { %1372 = vmatpush.bf16.msrb.mxu1 %v4151_v51 }
 0x250   : > { %1188 = vmatpush.bf16.msra.mxu2 %v4285_v34  ;;  %1804 = vmatpush.bf16.msrb.mxu3 %v4304_v18 }
 0x253   : > { %1373 = vmatpush.bf16.msrb.mxu1 %v4156_v53 }
 0x254   : > { %1189 = vmatpush.bf16.msra.mxu2 %v4290_v48  ;;  %1805 = vmatpush.bf16.msrb.mxu3 %v4308_v25 }
 0x255   : > { %v1323_v42 = vpop.permute.xlu2 %1322 }
 0x257   : > { %1374 = vmatpush.bf16.msrb.mxu1 %v4159_v54 }
 0x258   : > { %1190 = vmatpush.bf16.msra.mxu2 %v4295_v31  ;;  %1990 = vmatpush.bf16.msra.mxu3 %v4151_v51 }
 0x25b   : > { %1375 = vmatpush.bf16.msrb.mxu1 %v4163_v55 }
 0x25c   : > { %1191 = vmatpush.bf16.msra.mxu2 %v4299_v38  ;;  %1991 = vmatpush.bf16.msra.mxu3 %v4156_v53 }
 0x25f   : > { %1376 = vmatpush.bf16.msrb.mxu1 %v4168_v57 }
 0x260   : > { %1192 = vmatpush.bf16.msra.mxu2 %v4304_v18  ;;  %1992 = vmatpush.bf16.msra.mxu3 %v4159_v54 }
 0x262   : > { %v1328_v12 = vpop.permute.xlu2 %1327 }
 0x263   : > { %1377 = vmatpush.bf16.msrb.mxu1 %v4171_v58 }
 0x264   : > { %v4319_v27 = vpop.f32.mrf.mxu0  ;;  %1193 = vmatpush.bf16.msra.mxu2 %v4308_v25  ;;  %1993 = vmatpush.bf16.msra.mxu3 %v4163_v55 }
 0x267   : > { %1378 = vmatpush.bf16.msrb.mxu1 %v4176_v60 }
 0x268   : > { %1994 = vmatpush.bf16.msra.mxu3 %v4168_v57 }
 0x26b   : > { %1379 = vmatpush.bf16.msrb.mxu1 %v4179_v61 }
 0x26c   : > { %v4325_v41 = vpop.f32.mrf.mxu0  ;;  %1995 = vmatpush.bf16.msra.mxu3 %v4171_v58 }
 0x270   : > { %1996 = vmatpush.bf16.msra.mxu3 %v4176_v60 }
 0x274   : > { %v1147_v9 = vpop.f32.mrf.mxu0  ;;  %1997 = vmatpush.bf16.msra.mxu3 %v4179_v61 }
 0x275   : > { %v1148_v13 = vadd.f32 %v1147_v9, %v4246_v49 }
 0x277   : > { %v1157_v16 = vsub.f32 %v1148_v13, %v4148_v50  ;;  %v1153_v49 = vfloor.f32 %v1148_v13  ;;  %v724_v50 = vsub.f32 %v715_v21, %v4113_v63 }
 0x279   : > { %v1159_v22 = vfloor.f32 %v1157_v16  ;;  %v1155_v39 = vsub.f32 %v1148_v13, %v1153_v49  ;;  %v726_v36 = vfloor.f32 %v724_v50 }
 0x27b   : > { %v1161_v35 = vsub.f32 %v1157_v16, %v1159_v22  ;;  %v728_v16 = vsub.f32 %v724_v50, %v726_v36 }
 0x27c   : > { %v1150_v20 = vpop.f32.mrf.mxu0 }
 0x27d   : > { %v1151_v23 = vadd.f32 %v1150_v20, %v1128_v5  ;;  %v4332_v24 = vpop.permute.xlu2 %1527  ;;  %v1163_v44 = vsub.f32 %v1155_v39, %v1161_v35 }
 0x27f   : > { %v1154_v29 = vfloor.f32 %v1151_v23  ;;  %v1158_v33 = vsub.f32 %v1151_v23, %v4154_v52 }
 0x281   : > { %v1160_v37 = vfloor.f32 %v1158_v33  ;;  %v1156_v40 = vsub.f32 %v1151_v23, %v1154_v29 }
 0x283   : > { %v1162_v1 = vsub.f32 %v1158_v33, %v1160_v37 }
 0x284   : > { %v1347_v7 = vpop.f32.mrf.mxu0 }
 0x285   : > { %v1164_v5 = vsub.f32 %v1156_v40, %v1162_v1  ;;  %v695_v52 = vpop.permute.xlu2 %694  ;;  %v1348_v8 = vadd.f32 %v1347_v7, %v1323_v42  ;;  %v722_v42 = vsub.f32 %v715_v21, %v720_v45 }
 0x286   : > { %v718_v9 = vadd.f32 %v717_v4, %v695_v52 }
 0x287   : > { %v4342_v63 = vpack.c.bf16 %v1164_v5, %v1163_v44  ;;  %v1357_v17 = vsub.f32 %v1348_v8, %v4181_v62  ;;  %v751_v49 = vsub.f32 %v722_v42, %v744_v47  ;;  %v1353_v21 = vfloor.f32 %v1348_v8 }
 0x288   : > { %v725_v13 = vsub.f32 %v718_v9, %v4121_v6  ;;  %v721_v14 = vfloor.f32 %v718_v9  ;;  %v730_v6 = vsub.f32 %v722_v42, %v728_v16  ;;  %v1566_v47 = vstv %s1565_s30  ;;  %v4391_v42 = vld [vmem:[#allocation9 + $0x68] sm:$0xff] }
 0x289   : > { %1180 = vmatmul.bf16.vlgmr.msra.gmra.mxu1 %v4342_v63  ;;  %v1359_v33 = vfloor.f32 %v1357_v17 }
 0x28a   : > { %v727_v20 = vfloor.f32 %v725_v13  ;;  %1578 = vmatpush.bf16.msra.mxu1 %v4151_v51  ;;  %v723_v22 = vsub.f32 %v718_v9, %v721_v14  ;;  %v753_v1 = vsel %vm738_vm4, %v751_v49, %v730_v6  ;;  %v4397_v6 = vld [vmem:[#allocation9 + $0x60] sm:$0xff]  ;;  %v1567_v49 = vadd.s32 %v1566_v47, %v4344_v46  ;;  %v3062_v47 = vld [vmem:[#allocation6 + $0xf0] sm:$0xf] }
 0x28b   : > { %v1361_v4 = vsub.f32 %v1357_v17, %v1359_v33  ;;  %v4401_v33 = vld [vmem:[#allocation9 + $0x58] sm:$0xff] }
 0x28c   : > { %v729_v23 = vsub.f32 %v725_v13, %v727_v20  ;;  %v1350_v29 = vpop.f32.mrf.mxu0  ;;  %vm1568_vm5 = vcmp.lt.s32.totalorder %v1567_v49, 1536  ;;  %v3054_v49 = vld [vmem:[#allocation6 + $0x60] sm:$0xf] }
 0x28d   : > { %v1351_v50 = vadd.f32 %v1350_v29, %v1328_v12  ;;  %v749_v35 = vpop.permute.xlu2 %748  ;;  %v1355_v12 = vsub.f32 %v1348_v8, %v1353_v21  ;;  %v1523_v8 = vpop.permute.xlu1 %1522  ;;  %vm2976_vm6 = vmpackc.low %vm1568_vm5, %vm1568_vm5 }
 0x28e   : > { %v731_v37 = vsub.f32 %v723_v22, %v729_v23  ;;  %1579 = vmatpush.bf16.msra.mxu1 %v4156_v53  ;;  %v752_v62 = vsub.f32 %v723_v22, %v749_v35 }
 0x28f   : > { %v1354_v39 = vfloor.f32 %v1351_v50  ;;  %v1358_v40 = vsub.f32 %v1351_v50, %v4187_v0  ;;  %v1363_v52 = vsub.f32 %v1355_v12, %v1361_v4  ;;  %v4421_v4 = vld [vmem:[#allocation9 + $0x38] sm:$0xff]  ;;  %v4434_v12 = vld [vmem:[#allocation9 + $0x28] sm:$0xff] }
 0x290   : > { %v754_v43 = vsel %vm738_vm4, %v752_v62, %v731_v37 }
 0x291   : > { %v1360_v36 = vfloor.f32 %v1358_v40  ;;  %v755_v44 = vpack.c.bf16 %v754_v43, %v753_v1  ;;  %v1356_v5 = vsub.f32 %v1351_v50, %v1354_v39  ;;  %v4411_v39 = vld [vmem:[#allocation9 + $0x48] sm:$0xff]  ;;  %v4416_v1 = vld [vmem:[#allocation9 + $0x40] sm:$0xff] }
 0x292   : > { %1580 = vmatpush.bf16.msra.mxu1 %v4159_v54 }
 0x293   : > { %v1362_v7 = vsub.f32 %v1358_v40, %v1360_v36  ;;  %986 = vmatmul.bf16.vlgmr.msrb.gmra.mxu2 %v755_v44  ;;  %v4429_v44 = vld [vmem:[#allocation9 + $0x30] sm:$0xff] }
 0x294   : > { %1386 = vmatpush.bf16.msrb.mxu2 %v4276_v26 }
 0x295   : > { %v1364_v9 = vsub.f32 %v1356_v5, %v1362_v7  ;;  %v4439_v5 = vld [vmem:[#allocation9 + $0x20] sm:$0xff] }
 0x296   : > { %1581 = vmatpush.bf16.msra.mxu1 %v4163_v55 }
 0x297   : > { %v4361_v0 = vpack.c.bf16 %v1364_v9, %v1363_v52  ;;  %v4446_v52 = vld [vmem:[#allocation9 + $0x18] sm:$0xff]  ;;  %v3066_v9 = vld [vmem:[#allocation6 + $0x138] sm:$0xf] }
 0x298   : > { %1387 = vmatpush.bf16.msrb.mxu2 %v4279_v11 }
 0x299   : > { %1380 = vmatmul.bf16.vlgmr.msrb.gmra.mxu1 %v4361_v0 }
 0x29a   : > { %1582 = vmatpush.bf16.msra.mxu1 %v4168_v57 }
 0x29c   : > { %1388 = vmatpush.bf16.msrb.mxu2 %v4285_v34 }
 0x29e   : > { %1583 = vmatpush.bf16.msra.mxu1 %v4171_v58 }
 0x2a0   : > { %1389 = vmatpush.bf16.msrb.mxu2 %v4290_v48 }
 0x2a2   : > { %1584 = vmatpush.bf16.msra.mxu1 %v4176_v60 }
 0x2a3   : > { %1194 = vmatmul.bf16.vlgmr.msra.gmra.mxu2 %v4213_v30  ;;  %v4387_v30 = vld [vmem:[#allocation9 + $0x70] sm:$0xff] }
 0x2a4   : > { %v1547_v45 = vpop.f32.mrf.mxu0  ;;  %1390 = vmatpush.bf16.msrb.mxu2 %v4295_v31 }
 0x2a5   : > { %v1548_v13 = vadd.f32 %v1547_v45, %v1523_v8  ;;  %v3277_v8 = vld [vmem:[#allocation6 + $0x158] sm:$0xf0] }
 0x2a6   : > { %1585 = vmatpush.bf16.msra.mxu1 %v4179_v61 }
 0x2a7   : > { %v1557_v14 = vsub.f32 %v1548_v13, %v4220_v3  ;;  %v1553_v3 = vfloor.f32 %v1548_v13 }
 0x2a8   : > { %1391 = vmatpush.bf16.msrb.mxu2 %v4299_v38 }
 0x2a9   : > { %v1559_v17 = vfloor.f32 %v1557_v14  ;;  %v1555_v50 = vsub.f32 %v1548_v13, %v1553_v3  ;;  %v4454_v13 = vld [vmem:[#allocation9 + $0x10] sm:$0xff]  ;;  %v3058_v3 = vld [vmem:[#allocation6 + $0xa8] sm:$0xf] }
 0x2aa   : > { %1736 = vmatpush.msrb.mxu1 %v4381_v15 }
 0x2ab   : > { %v1561_v29 = vsub.f32 %v1557_v14, %v1559_v17  ;;  %v3067_v14 = vor.u32 %v3277_v8, %v3066_v9  ;;  %v4464_v17 = vld [vmem:[#allocation9] sm:$0xff]  ;;  %v3269_v9 = vld [vmem:[#allocation8 + $0x6c] sm:$0xf0] }
 0x2ac   : > { %1737 = vmatpush.msrb.mxu1 %v4387_v30  ;;  %v1550_v16 = vpop.f32.mrf.mxu0  ;;  %1392 = vmatpush.bf16.msrb.mxu2 %v4304_v18 }
 0x2ad   : > { %v1551_v20 = vadd.f32 %v1550_v16, %v4332_v24  ;;  %v1563_v62 = vsub.f32 %v1555_v50, %v1561_v29  ;;  %v4459_v16 = vld [vmem:[#allocation9 + $0x8] sm:$0xff]  ;;  %v3274_v29 = vld [vmem:[#allocation6 + $0x80] sm:$0xf0]  ;;  %v3050_v50 = vld [vmem:[#allocation6 + $0x18] sm:$0xf] }
 0x2ae   : > { %1738 = vmatpush.msrb.mxu1 %v4391_v42 }
 0x2af   : > { %v1554_v22 = vfloor.f32 %v1551_v20  ;;  %v1558_v23 = vsub.f32 %v1551_v20, %v4228_v32  ;;  %v4407_v32 = vld [vmem:[#allocation9 + $0x50] sm:$0xff] }
 0x2b0   : > { %1739 = vmatpush.msrb.mxu1 %v4397_v6  ;;  %1393 = vmatpush.bf16.msrb.mxu2 %v4308_v25 }
 0x2b1   : > { %v1560_v24 = vfloor.f32 %v1558_v23  ;;  %v1556_v35 = vsub.f32 %v1551_v20, %v1554_v22  ;;  %v3275_v22 = vld [vmem:[#allocation6 + $0xc8] sm:$0xf0] }
 0x2b2   : > { %1740 = vmatpush.msrb.mxu1 %v4401_v33 }
 0x2b3   : > { %v1562_v37 = vsub.f32 %v1558_v23, %v1560_v24  ;;  %1394 = vmatmul.bf16.vlgmr.msrb.gmra.mxu2 %v4342_v63  ;;  %v3059_v23 = vor.u32 %v3275_v22, %v3058_v3  ;;  %v3055_v24 = vor.u32 %v3274_v29, %v3054_v49  ;;  %v3029_v3 = vld [vmem:[#allocation8 + $0x10] sm:$0xf] }
 0x2b4   : > { %1592 = vmatpush.bf16.msra.mxu2 %v4276_v26  ;;  %1741 = vmatpush.msrb.mxu1 %v4407_v32  ;;  %v3268_v22 = vld [vmem:[#allocation8 + $0x2c] sm:$0xf0] }
 0x2b5   : > { %v1564_v21 = vsub.f32 %v1556_v35, %v1562_v37  ;;  %v3273_v35 = vld [vmem:[#allocation6 + $0x38] sm:$0xf0] }
 0x2b6   : > { %1742 = vmatpush.msrb.mxu1 %v4411_v39  ;;  %v3051_v37 = vor.u32 %v3273_v35, %v3050_v50 }
 0x2b7   : > { %v2977_v40 = vpack.c.bf16 %v1564_v21, %v1563_v62  ;;  %v3037_v21 = vld [vmem:[#allocation8 + $0x90] sm:$0xf] }
 0x2b8   : > { %1593 = vmatpush.bf16.msra.mxu2 %v4279_v11  ;;  %1743 = vmatpush.msrb.mxu1 %v4416_v1  ;;  %v4419_v43 = vpop.f32.mrf.mxu0  ;;  %v1573_v63 = vpop.xlane.xlu1 %1572 }
 0x2b9   : > { %3026 = vmatmul.msk.bf16.vlgmr.msrb.gmra.mxu3 %vm2976_vm6, %v2977_v40  ;;  %v4425_v36 = vadd.f32 %v1573_v63, %v4253_v19  ;;  %2978 = vmatmul.msk.bf16.vlgmr.msra.gmra.mxu1 %vm2976_vm6, %v2977_v40  ;;  %v1575_v19 = vpop.xlane.xlu0 %1574  ;;  %v3270_v40 = vld [vmem:[#allocation8 + $0xac] sm:$0xf0] }
 0x2ba   : > { %1744 = vmatpush.msrb.mxu1 %v4421_v4  ;;  %2148 = vmatpush.msrb.mxu3 %v4381_v15  ;;  %v4450_v45 = vadd.f32 %v1575_v19, %v4260_v2  ;;  %v3276_v2 = vld [vmem:[#allocation6 + $0x110] sm:$0xf0]  ;;  %v3038_v63 = vor.u32 %v3270_v40, %v3037_v21  ;;  %v3033_v19 = vld [vmem:[#allocation8 + $0x50] sm:$0xf] }
 0x2bb   : > { %1728 = vperm.xlu2 %3438, %v4425_v36   ;;  %v3063_v20 = vor.u32 %v3276_v2, %v3062_v47  ;;  %v1058_v47 = vld [vmem:[%s4025_s28] sm:$0xff]  ;;  %v1258_v21 = vld [vmem:[%s4025_s28 + $0x8] sm:$0xff] }
 0x2bc   : > { %1594 = vmatpush.bf16.msra.mxu2 %v4285_v34  ;;  %1745 = vmatpush.msrb.mxu1 %v4429_v44 }
 0x2bd   : > { %2149 = vmatpush.msrb.mxu3 %v4387_v30 }
 0x2be   : > { %1746 = vmatpush.msrb.mxu1 %v4434_v12 }
 0x2bf   : > { %2150 = vmatpush.msrb.mxu3 %v4391_v42 }
 0x2c0   : > { %1595 = vmatpush.bf16.msra.mxu2 %v4290_v48  ;;  %1747 = vmatpush.msrb.mxu1 %v4439_v5  ;;  %v4442_v7 = vpop.f32.mrf.mxu0 }
 0x2c1   : > { %2151 = vmatpush.msrb.mxu3 %v4397_v6  ;;  %1780 = vadd.xlane.f32.xlu1 %v4442_v7 }
 0x2c2   : > { %1748 = vmatpush.msrb.mxu1 %v4446_v52 }
 0x2c3   : > { %2152 = vmatpush.msrb.mxu3 %v4401_v33  ;;  %1733 = vperm.xlu2 %3438, %v4450_v45  }
 0x2c4   : > { %1596 = vmatpush.bf16.msra.mxu2 %v4295_v31  ;;  %1749 = vmatpush.msrb.mxu1 %v4454_v13 }
 0x2c5   : > { %2153 = vmatpush.msrb.mxu3 %v4407_v32 }
 0x2c6   : > { %1750 = vmatpush.msrb.mxu1 %v4459_v16 }
 0x2c7   : > { %2154 = vmatpush.msrb.mxu3 %v4411_v39 }
 0x2c8   : > { %1597 = vmatpush.bf16.msra.mxu2 %v4299_v38  ;;  %1751 = vmatpush.msrb.mxu1 %v4464_v17 }
 0x2c9   : > { %2155 = vmatpush.msrb.mxu3 %v4416_v1  ;;  %1752 = vmatmul.f32.vlgmr.msrb.gmra.mxu1 %v4419_v43 }
 0x2ca   : > { %1921 = vmatpush.bf16.msra.mxu1 %v3067_v14  ;;  %v3034_v14 = vor.u32 %v3269_v9, %v3033_v19 }
 0x2cb   : > { %2156 = vmatpush.msrb.mxu3 %v4421_v4 }
 0x2cc   : > { %1598 = vmatpush.bf16.msra.mxu2 %v4304_v18 }
 0x2cd   : > { %2157 = vmatpush.msrb.mxu3 %v4429_v44 }
 0x2ce   : > { %1922 = vmatpush.bf16.msra.mxu1 %v3063_v20 }
 0x2cf   : > { %2158 = vmatpush.msrb.mxu3 %v4434_v12 }
 0x2d0   : > { %1599 = vmatpush.bf16.msra.mxu2 %v4308_v25 }
 0x2d1   : > { %2159 = vmatpush.msrb.mxu3 %v4439_v5  ;;  %1755 = vmatmul.f32.gmra.mxu1 %v4442_v7 }
 0x2d2   : > { %1923 = vmatpush.bf16.msra.mxu1 %v3059_v23 }
 0x2d3   : > { %1600 = vmatmul.bf16.vlgmr.msra.gmra.mxu2 %v4361_v0  ;;  %2160 = vmatpush.msrb.mxu3 %v4446_v52 }
 0x2d4   : > { %1784 = vmatpush.bf16.msrb.mxu2 %v4151_v51  ;;  %v4485_v51 = vld [vmem:[%s4037_s14] sm:$0xff]  ;;  %s2513_s14 = sshll.u32 %s4039_s11, 4  ;;  %s2514_s14 = int_to_ptr.vmem [resolvable:$true] %s2513_s14 }
 0x2d5   : > { %2161 = vmatpush.msrb.mxu3 %v4454_v13 }
 0x2d6   : > { %1924 = vmatpush.bf16.msra.mxu1 %v3055_v24  ;;  %v3030_v24 = vor.u32 %v3268_v22, %v3029_v3 }
 0x2d7   : > { %2162 = vmatpush.msrb.mxu3 %v4459_v16 }
 0x2d8   : > { %1785 = vmatpush.bf16.msrb.mxu2 %v4156_v53  ;;  %v1049_v53 = vpop.f32.mrf.mxu1 }
 0x2d9   : > { %2163 = vmatpush.msrb.mxu3 %v4464_v17  ;;  %v1056_v8 = vsub.f32 1.0, %v1049_v53 }
 0x2da   : > { %1925 = vmatpush.bf16.msra.mxu1 %v3051_v37  ;;  %v1059_v37 = vld [vmem:[%s4025_s28 + $0x40] sm:$0xff] }
 0x2db   : > { %v1060_v23 = vmul.f32 %v1058_v47, %v1056_v8 }
 0x2dc   : > { %1786 = vmatpush.bf16.msrb.mxu2 %v4159_v54 }
 0x2dd   : > { %3068 = vmatmul.msk.bf16.vlgmr.msra.gmra.mxu1 %vm669_vm1, %v4485_v51 }
 0x2e0   : > { %1787 = vmatpush.bf16.msrb.mxu2 %v4163_v55  ;;  %v1051_v54 = vpop.f32.mrf.mxu1  ;;  %v3045_v55 = vld [vmem:[#allocation8 + $0x110] sm:$0xf] }
 0x2e1   : > { %v1057_v35 = vsub.f32 1.0, %v1051_v54 }
 0x2e4   : > { %1788 = vmatpush.bf16.msrb.mxu2 %v4168_v57  ;;  %v3272_v57 = vld [vmem:[#allocation8 + $0x12c] sm:$0xf0] }
 0x2e8   : > { %1789 = vmatpush.bf16.msrb.mxu2 %v4171_v58  ;;  %v3046_v58 = vor.u32 %v3272_v57, %v3045_v55  ;;  %v4517_v57 = vld [vmem:[%s4006_s18] sm:$0xff]  ;;  %s2396_s18 = sadd.s32 1024, %s4377_s24 }
 0x2ea   : > { %1855 = vmatpush.bf16.msra.mxu0 %v3046_v58 }
 0x2ec   : > { %1790 = vmatpush.bf16.msrb.mxu2 %v4176_v60  ;;  %1778 = vadd.xlane.f32.xlu2 %v4419_v43  ;;  %v3041_v60 = vld [vmem:[#allocation8 + $0xd0] sm:$0xf] }
 0x2f0   : > { %1791 = vmatpush.bf16.msrb.mxu2 %v4179_v61  ;;  %v3271_v61 = vld [vmem:[#allocation8 + $0xec] sm:$0xf0] }
 0x2f1   : > { %v3042_v0 = vor.u32 %v3271_v61, %v3041_v60 }
 0x2f3   : > { %1856 = vmatpush.bf16.msra.mxu0 %v3042_v0  ;;  %v1256_v0 = vsub.f32 1.0, %v4165_v56 }
 0x2f4   : > { %1942 = vmatpush.msra.mxu2 %v4381_v15 }
 0x2f5   : > { %v1260_v19 = vmul.f32 %v1258_v21, %v1256_v0  ;;  %v4557_v21 = vld [vmem:[#allocation12 + $0x28] sm:$0xff] }
 0x2f6   : > { %1943 = vmatpush.msra.mxu2 %v4387_v30 }
 0x2f7   : > { %1857 = vmatpush.bf16.msra.mxu0 %v3038_v63 }
 0x2f8   : > { %1944 = vmatpush.msra.mxu2 %v4391_v42 }
 0x2fa   : > { %1945 = vmatpush.msra.mxu2 %v4397_v6 }
 0x2fb   : > { %1858 = vmatpush.bf16.msra.mxu0 %v3034_v14  ;;  %v1259_v14 = vld [vmem:[%s4025_s28 + $0x48] sm:$0xff] }
 0x2fc   : > { %1946 = vmatpush.msra.mxu2 %v4401_v33 }
 0x2fe   : > { %1947 = vmatpush.msra.mxu2 %v4407_v32 }
 0x2ff   : > { %1859 = vmatpush.bf16.msra.mxu0 %v3030_v24 }
 0x300   : > { %1948 = vmatpush.msra.mxu2 %v4411_v39 }
 0x302   : > { %1949 = vmatpush.msra.mxu2 %v4416_v1  ;;  %3047 = vmatmul.msk.bf16.vlgmr.msra.gmra.mxu0 %vm669_vm1, %v4517_v57 }
 0x303   : > { %2004 = vmatpush.bf16.msrb.mxu0 %v4276_v26 }
 0x304   : > { %1950 = vmatpush.msra.mxu2 %v4421_v4 }
 0x306   : > { %1951 = vmatpush.msra.mxu2 %v4429_v44  ;;  %v1181_v62 = vpop.f32.mrf.mxu1 }
 0x307   : > { %2005 = vmatpush.bf16.msrb.mxu0 %v4279_v11 }
 0x308   : > { %1952 = vmatpush.msra.mxu2 %v4434_v12 }
 0x30a   : > { %1953 = vmatpush.msra.mxu2 %v4439_v5 }
 0x30b   : > { %2006 = vmatpush.bf16.msrb.mxu0 %v4285_v34 }
 0x30c   : > { %1954 = vmatpush.msra.mxu2 %v4446_v52 }
 0x30e   : > { %1955 = vmatpush.msra.mxu2 %v4454_v13  ;;  %v1183_v49 = vpop.f32.mrf.mxu1 }
 0x30f   : > { %2007 = vmatpush.bf16.msrb.mxu0 %v4290_v48 }
 0x310   : > { %1956 = vmatpush.msra.mxu2 %v4459_v16 }
 0x312   : > { %1957 = vmatpush.msra.mxu2 %v4464_v17 }
 0x313   : > { %2008 = vmatpush.bf16.msrb.mxu0 %v4295_v31 }
 0x316   : > { %v987_v2 = vpop.f32.mrf.mxu2  ;;  %v1381_v60 = vpop.f32.mrf.mxu1 }
 0x317   : > { %v988_v20 = vadd.f32 %v987_v2, %v4319_v27  ;;  %2009 = vmatpush.bf16.msrb.mxu0 %v4299_v38 }
 0x319   : > { %v1054_v29 = vmul.f32 %v1049_v53, %v988_v20  ;;  %v1061_v53 = vmul.f32 %v1059_v37, %v1057_v35 }
 0x31b   : > { %v1062_v50 = vadd.f32 %v1060_v23, %v1054_v29  ;;  %2010 = vmatpush.bf16.msrb.mxu0 %v4304_v18  ;;  %v1456_v23 = vsub.f32 1.0, %v4208_v10  ;;  %v1458_v29 = vld [vmem:[%s4025_s28 + $0x10] sm:$0xff] }
 0x31d   : > { %1064 = vst [vmem:[%s4039_s11] sm:$0xff] %v1062_v50 }
 0x31e   : > { %v989_v55 = vpop.f32.mrf.mxu2  ;;  %v1383_v8 = vpop.f32.mrf.mxu1 }
 0x31f   : > { %v990_v27 = vadd.f32 %v989_v55, %v4325_v41  ;;  %2011 = vmatpush.bf16.msrb.mxu0 %v4308_v25  ;;  %v1457_v55 = vsub.f32 1.0, %v4211_v28 }
 0x321   : > { %v1055_v58 = vmul.f32 %v1051_v54, %v990_v27  ;;  %v1257_v54 = vsub.f32 1.0, %v4173_v59 }
 0x323   : > { %v1063_v61 = vadd.f32 %v1061_v53, %v1055_v58  ;;  %v4552_v53 = vld [vmem:[#allocation12 + $0x30] sm:$0xff] }
 0x324   : > { %v1459_v58 = vld [vmem:[%s4025_s28 + $0x50] sm:$0xff] }
 0x325   : > { %1065 = vst [vmem:[%s4039_s11 + $0x40] sm:$0xff] %v1063_v61 }
 0x326   : > { %v1195_v40 = vpop.f32.mrf.mxu2 }
 0x327   : > { %v1196_v63 = vadd.f32 %v1195_v40, %v1181_v62  ;;  %v1261_v62 = vmul.f32 %v1259_v14, %v1257_v54  ;;  %v1729_v40 = vpop.permute.xlu2 %1728  ;;  %v4565_v54 = vld [vmem:[#allocation12 + $0x18] sm:$0xff]  ;;  %v1772_v14 = vstv %s1771_s2 }
 0x329   : > { %v1254_v41 = vmul.f32 %v4165_v56, %v1196_v63 }
 0x32b   : > { %v1262_v9 = vadd.f32 %v1260_v19, %v1254_v41  ;;  %v4561_v41 = vld [vmem:[#allocation12 + $0x20] sm:$0xff] }
 0x32d   : > { %1264 = vst [vmem:[%s4039_s11 + $0x8] sm:$0xff] %v1262_v9 }
 0x32e   : > { %v1197_v47 = vpop.f32.mrf.mxu2 }
 0x32f   : > { %v1198_v2 = vadd.f32 %v1197_v47, %v1183_v49  ;;  %v1734_v47 = vpop.permute.xlu2 %1733 }
 0x331   : > { %v1255_v20 = vmul.f32 %v4173_v59, %v1198_v2  ;;  %v1460_v59 = vmul.f32 %v1458_v29, %v1456_v23  ;;  %v1773_v23 = vadd.s32 %v1772_v14, %v4344_v46  ;;  %v1664_v29 = vld [vmem:[%s4025_s28 + $0x18] sm:$0xff] }
 0x333   : > { %v1263_v22 = vadd.f32 %v1261_v62, %v1255_v20  ;;  %v4569_v62 = vld [vmem:[#allocation12 + $0x10] sm:$0xff]  ;;  %vm1774_vm7 = vcmp.lt.s32.totalorder %v1773_v23, 1536 }
 0x334   : > { %v1781_v3 = vpop.xlane.xlu1 %1780  ;;  %vm3021_vm8 = vmpackc.low %vm1774_vm7, %vm1774_vm7  ;;  %v3286_v23 = vld [vmem:[#allocation6 + $0x114] sm:$0xf0] }
 0x335   : > { %v4536_v56 = vadd.f32 %v1781_v3, %v4450_v45  ;;  %1265 = vst [vmem:[%s4039_s11 + $0x48] sm:$0xff] %v1263_v22  ;;  %v4545_v45 = vld [vmem:[#allocation12 + $0x38] sm:$0xff] }
 0x336   : > { %v1587_v49 = vpop.f32.mrf.mxu1  ;;  %v1395_v24 = vpop.f32.mrf.mxu2  ;;  %2203 = vmatpush.bf16.msra.mxu0 %v4545_v45 }
 0x337   : > { %1939 = vperm.xlu1 %3437, %v4536_v56   ;;  %v1396_v50 = vadd.f32 %v1395_v24, %v1381_v60 }
 0x339   : > { %v1454_v35 = vmul.f32 %v4208_v10, %v1396_v50  ;;  %v1461_v10 = vmul.f32 %v1459_v58, %v1457_v55 }
 0x33a   : > { %2204 = vmatpush.bf16.msra.mxu0 %v4552_v53 }
 0x33b   : > { %v1462_v37 = vadd.f32 %v1460_v59, %v1454_v35  ;;  %v4575_v35 = vld [vmem:[#allocation12 + $0x8] sm:$0xff] }
 0x33d   : > { %1464 = vst [vmem:[%s4039_s11 + $0x10] sm:$0xff] %v1462_v37 }
 0x33e   : > { %v4550_v27 = vpop.f32.mrf.mxu1  ;;  %v1397_v60 = vpop.f32.mrf.mxu2  ;;  %2205 = vmatpush.bf16.msra.mxu0 %v4557_v21 }
 0x33f   : > { %v1398_v61 = vadd.f32 %v1397_v60, %v1383_v8  ;;  %v1655_v8 = vpop.f32.mrf.mxu3 }
 0x340   : > { %v1662_v22 = vsub.f32 1.0, %v1655_v8 }
 0x341   : > { %v1455_v0 = vmul.f32 %v4211_v28, %v1398_v61 }
 0x342   : > { %2206 = vmatpush.bf16.msra.mxu0 %v4561_v41  ;;  %v1666_v55 = vmul.f32 %v1664_v29, %v1662_v22  ;;  %v3110_v22 = vld [vmem:[#allocation6 + $0xf4] sm:$0xf]  ;;  %v1665_v29 = vld [vmem:[%s4025_s28 + $0x58] sm:$0xff] }
 0x343   : > { %v1463_v63 = vadd.f32 %v1461_v10, %v1455_v0 }
 0x345   : > { %1465 = vst [vmem:[%s4039_s11 + $0x50] sm:$0xff] %v1463_v63  ;;  %v3287_v63 = vld [vmem:[#allocation6 + $0x15c] sm:$0xf0] }
 0x346   : > { %v1753_v19 = vpop.f32.mrf.mxu1  ;;  %2207 = vmatpush.bf16.msra.mxu0 %v4565_v54 }
 0x347   : > { %v1754_v9 = vadd.f32 %v1753_v19, %v1729_v40  ;;  %v3114_v40 = vld [vmem:[#allocation6 + $0x13c] sm:$0xf]  ;;  %v4578_v19 = vld [vmem:[#allocation12] sm:$0xff] }
 0x349   : > { %v1763_v28 = vsub.f32 %v1754_v9, %v4419_v43  ;;  %v1759_v24 = vfloor.f32 %v1754_v9 }
 0x34a   : > { %2208 = vmatpush.bf16.msra.mxu0 %v4569_v62 }
 0x34b   : > { %v1765_v20 = vfloor.f32 %v1763_v28  ;;  %v1761_v60 = vsub.f32 %v1754_v9, %v1759_v24  ;;  %v3115_v9 = vor.u32 %v3287_v63, %v3114_v40  ;;  %v3284_v40 = vld [vmem:[#allocation6 + $0x84] sm:$0xf0]  ;;  %v3278_v63 = vld [vmem:[#allocation8 + $0x30] sm:$0xf0] }
 0x34d   : > { %v1767_v43 = vsub.f32 %v1763_v28, %v1765_v20 }
 0x34e   : > { %v1756_v2 = vpop.f32.mrf.mxu1  ;;  %2209 = vmatpush.bf16.msra.mxu0 %v4575_v35 }
 0x34f   : > { %v1757_v3 = vadd.f32 %v1756_v2, %v1734_v47  ;;  %v1657_v2 = vpop.f32.mrf.mxu3 }
 0x350   : > { %v1663_v20 = vsub.f32 1.0, %v1657_v2 }
 0x351   : > { %v1760_v50 = vfloor.f32 %v1757_v3  ;;  %v1764_v59 = vsub.f32 %v1757_v3, %v4442_v7  ;;  %v1769_v7 = vsub.f32 %v1761_v60, %v1767_v43  ;;  %v3106_v43 = vld [vmem:[#allocation6 + $0xac] sm:$0xf] }
 0x352   : > { %2210 = vmatpush.bf16.msra.mxu0 %v4578_v19 }
 0x353   : > { %v1766_v37 = vfloor.f32 %v1764_v59  ;;  %v1762_v61 = vsub.f32 %v1757_v3, %v1760_v50  ;;  %v3111_v50 = vor.u32 %v3286_v23, %v3110_v22  ;;  %v1871_v23 = vld [vmem:[%s4025_s28 + $0x60] sm:$0xff] }
 0x355   : > { %v1768_v10 = vsub.f32 %v1764_v59, %v1766_v37  ;;  %v3285_v37 = vld [vmem:[#allocation6 + $0xcc] sm:$0xf0] }
 0x356   : > { %v1601_v58 = vpop.f32.mrf.mxu2 }
 0x357   : > { %v1602_v0 = vadd.f32 %v1601_v58, %v1587_v49  ;;  %v1770_v14 = vsub.f32 %v1762_v61, %v1768_v10  ;;  %v3107_v61 = vor.u32 %v3285_v37, %v3106_v43 }
 0x359   : > { %v1660_v47 = vmul.f32 %v1655_v8, %v1602_v0  ;;  %v3022_v49 = vpack.c.bf16 %v1770_v14, %v1769_v7  ;;  %v1667_v8 = vmul.f32 %v1665_v29, %v1663_v20  ;;  %v3102_v0 = vld [vmem:[#allocation6 + $0x64] sm:$0xf]  ;;  %v1870_v20 = vld [vmem:[%s4025_s28 + $0x20] sm:$0xff] }
 0x35a   : > { %v4581_v28 = vpop.f32.mrf.mxu1 }
 0x35b   : > { %1984 = vadd.xlane.f32.xlu2 %v4581_v28  ;;  %v1668_v3 = vadd.f32 %v1666_v55, %v1660_v47  ;;  %3023 = vmatmul.msk.bf16.vlgmr.msrb.gmra.mxu2 %vm3021_vm8, %v3022_v49 }
 0x35c   : > { %3074 = vmatmul.msk.bf16.vlgmr.msrb.gmra.mxu0 %vm3021_vm8, %v3022_v49  ;;  %2127 = vmatpush.bf16.msrb.mxu2 %v3115_v9  ;;  %v1807_v9 = vpop.f32.mrf.mxu3 }
 0x35d   : > { %1670 = vst [vmem:[%s4039_s11 + $0x18] sm:$0xff] %v1668_v3  ;;  %2361 = vmatpush.msrb.mxu0 %v4381_v15  ;;  %v3103_v15 = vor.u32 %v3284_v40, %v3102_v0 }
 0x35e   : > { %v1603_v24 = vpop.f32.mrf.mxu2 }
 0x35f   : > { %v1604_v59 = vadd.f32 %v1603_v24, %v4550_v27  ;;  %2362 = vmatpush.msrb.mxu0 %v4387_v30  ;;  %v1779_v58 = vpop.xlane.xlu2 %1778  ;;  %v3098_v30 = vld [vmem:[#allocation6 + $0x1c] sm:$0xf]  ;;  %v3283_v27 = vld [vmem:[#allocation6 + $0x3c] sm:$0xf0] }
 0x360   : > { %v1782_v60 = vadd.f32 %v1779_v58, %v4425_v36  ;;  %2128 = vmatpush.bf16.msrb.mxu2 %v3111_v50  ;;  %v3099_v36 = vor.u32 %v3283_v27, %v3098_v30  ;;  %v3162_v30 = vld [vmem:[#allocation6 + $0x140] sm:$0xf]  ;;  %v3297_v27 = vld [vmem:[#allocation6 + $0x160] sm:$0xf0] }
 0x361   : > { %v1661_v55 = vmul.f32 %v1657_v2, %v1604_v59  ;;  %2363 = vmatpush.msrb.mxu0 %v4391_v42 }
 0x362   : > { %1934 = vperm.xlu0 %3439, %v1782_v60   ;;  %v4601_v42 = vpop.f32.mrf.mxu1 }
 0x363   : > { %v1669_v10 = vadd.f32 %v1667_v8, %v1661_v55  ;;  %2364 = vmatpush.msrb.mxu0 %v4397_v6  ;;  %v3093_v6 = vld [vmem:[#allocation8 + $0x114] sm:$0xf] }
 0x364   : > { %2129 = vmatpush.bf16.msrb.mxu2 %v3107_v61 }
 0x365   : > { %1671 = vst [vmem:[%s4039_s11 + $0x58] sm:$0xff] %v1669_v10  ;;  %2365 = vmatpush.msrb.mxu0 %v4401_v33  ;;  %v3282_v33 = vld [vmem:[#allocation8 + $0x130] sm:$0xf0] }
 0x367   : > { %2366 = vmatpush.msrb.mxu0 %v4407_v32  ;;  %v3094_v32 = vor.u32 %v3282_v33, %v3093_v6 }
 0x368   : > { %2130 = vmatpush.bf16.msrb.mxu2 %v3103_v15 }
 0x369   : > { %2367 = vmatpush.msrb.mxu0 %v4411_v39  ;;  %2061 = vmatpush.bf16.msrb.mxu1 %v3094_v32  ;;  %v3089_v39 = vld [vmem:[#allocation8 + $0xd4] sm:$0xf]  ;;  %v3163_v32 = vor.u32 %v3297_v27, %v3162_v30  ;;  %v2077_v30 = vld [vmem:[%s4025_s28 + $0x68] sm:$0xff] }
 0x36b   : > { %2368 = vmatpush.msrb.mxu0 %v4416_v1  ;;  %1958 = vmatmul.f32.vlgmr.msra.gmra.mxu2 %v4581_v28  ;;  %v3281_v1 = vld [vmem:[#allocation8 + $0xf0] sm:$0xf0] }
 0x36c   : > { %2131 = vmatpush.bf16.msrb.mxu2 %v3099_v36 }
 0x36d   : > { %2369 = vmatpush.msrb.mxu0 %v4421_v4  ;;  %v3090_v4 = vor.u32 %v3281_v1, %v3089_v39  ;;  %v3158_v39 = vld [vmem:[#allocation6 + $0xf8] sm:$0xf]  ;;  %v3296_v1 = vld [vmem:[#allocation6 + $0x118] sm:$0xf0] }
 0x36f   : > { %2370 = vmatpush.msrb.mxu0 %v4429_v44  ;;  %2062 = vmatpush.bf16.msrb.mxu1 %v3090_v4  ;;  %v3085_v44 = vld [vmem:[#allocation8 + $0x94] sm:$0xf]  ;;  %v3159_v4 = vor.u32 %v3296_v1, %v3158_v39 }
 0x371   : > { %2371 = vmatpush.msrb.mxu0 %v4434_v12  ;;  %v3280_v12 = vld [vmem:[#allocation8 + $0xb0] sm:$0xf0] }
 0x373   : > { %2372 = vmatpush.msrb.mxu0 %v4439_v5  ;;  %1961 = vmatmul.f32.gmra.mxu2 %v4601_v42  ;;  %v3086_v5 = vor.u32 %v3280_v12, %v3085_v44  ;;  %v3154_v44 = vld [vmem:[#allocation6 + $0xb0] sm:$0xf]  ;;  %v3295_v12 = vld [vmem:[#allocation6 + $0xd0] sm:$0xf0] }
 0x375   : > { %2373 = vmatpush.msrb.mxu0 %v4446_v52  ;;  %2063 = vmatpush.bf16.msrb.mxu1 %v3086_v5  ;;  %v3081_v52 = vld [vmem:[#allocation8 + $0x54] sm:$0xf] }
 0x377   : > { %2374 = vmatpush.msrb.mxu0 %v4454_v13  ;;  %v3279_v13 = vld [vmem:[#allocation8 + $0x70] sm:$0xf0] }
 0x379   : > { %2375 = vmatpush.msrb.mxu0 %v4459_v16  ;;  %v3082_v16 = vor.u32 %v3279_v13, %v3081_v52  ;;  %v3150_v52 = vld [vmem:[#allocation6 + $0x68] sm:$0xf] }
 0x37b   : > { %2376 = vmatpush.msrb.mxu0 %v4464_v17  ;;  %3116 = vmatmul.msk.bf16.vlgmr.msrb.gmra.mxu2 %vm669_vm1, %v4485_v51  ;;  %v3077_v17 = vld [vmem:[#allocation8 + $0x14] sm:$0xf] }
 0x37c   : > { %2064 = vmatpush.bf16.msrb.mxu1 %v3082_v16  ;;  %v3078_v7 = vor.u32 %v3278_v63, %v3077_v17  ;;  %v3146_v16 = vld [vmem:[#allocation6 + $0x20] sm:$0xf]  ;;  %v3293_v17 = vld [vmem:[#allocation6 + $0x40] sm:$0xf0] }
 0x37d   : > { %v3147_v63 = vor.u32 %v3293_v17, %v3146_v16 }
 0x37f   : > { %v1861_v2 = vpop.f32.mrf.mxu0 }
 0x380   : > { %2065 = vmatpush.bf16.msrb.mxu1 %v3078_v7  ;;  %v3141_v7 = vld [vmem:[#allocation8 + $0x118] sm:$0xf] }
 0x383   : > { %3095 = vmatmul.msk.bf16.vlgmr.msrb.gmra.mxu1 %vm669_vm1, %v4517_v57 }
 0x384   : > { %2217 = vmatpush.bf16.msra.mxu1 %v4276_v26  ;;  %v1868_v26 = vsub.f32 1.0, %v1861_v2 }
 0x386   : > { %v1872_v49 = vmul.f32 %v1870_v20, %v1868_v26  ;;  %v3137_v26 = vld [vmem:[#allocation8 + $0xd8] sm:$0xf] }
 0x388   : > { %2218 = vmatpush.bf16.msra.mxu1 %v4279_v11 }
 0x38c   : > { %1986 = vadd.xlane.f32.xlu0 %v4601_v42  ;;  %2219 = vmatpush.bf16.msra.mxu1 %v4285_v34 }
 0x390   : > { %2220 = vmatpush.bf16.msra.mxu1 %v4290_v48  ;;  %v1863_v48 = vpop.f32.mrf.mxu0 }
 0x394   : > { %2221 = vmatpush.bf16.msra.mxu1 %v4295_v31  ;;  %v1869_v31 = vsub.f32 1.0, %v1863_v48 }
 0x398   : > { %2222 = vmatpush.bf16.msra.mxu1 %v4299_v38  ;;  %v1809_v38 = vpop.f32.mrf.mxu3 }
 0x39c   : > { %2223 = vmatpush.bf16.msra.mxu1 %v4304_v18  ;;  %v1873_v18 = vmul.f32 %v1871_v23, %v1869_v31 }
 0x3a0   : > { %2224 = vmatpush.bf16.msra.mxu1 %v4308_v25 }
 0x3a4   : > { %2403 = vmatpush.bf16.msrb.mxu1 %v4545_v45 }
 0x3a8   : > { %2404 = vmatpush.bf16.msrb.mxu1 %v4552_v53  ;;  %v1978_v53 = vstv %s1977_s22 }
 0x3a9   : > { %v1940_v37 = vpop.permute.xlu1 %1939  ;;  %v1979_v0 = vadd.s32 %v1978_v53, %v4344_v46 }
 0x3ab   : > { %vm1980_vm9 = vcmp.lt.s32.totalorder %v1979_v0, 1536 }
 0x3ac   : > { %2405 = vmatpush.bf16.msrb.mxu1 %v4557_v21  ;;  %vm3069_vm10 = vmpackc.low %vm1980_vm9, %vm1980_vm9 }
 0x3b0   : > { %2406 = vmatpush.bf16.msrb.mxu1 %v4561_v41 }
 0x3b4   : > { %2407 = vmatpush.bf16.msrb.mxu1 %v4565_v54 }
 0x3b8   : > { %2408 = vmatpush.bf16.msrb.mxu1 %v4569_v62 }
 0x3bc   : > { %2409 = vmatpush.bf16.msrb.mxu1 %v4575_v35 }
 0x3c0   : > { %2410 = vmatpush.bf16.msrb.mxu1 %v4578_v19  ;;  %v3155_v19 = vor.u32 %v3295_v12, %v3154_v44  ;;  %v2184_v12 = vstv %s2183_s5 }
 0x3ce   : > { %v1985_v14 = vpop.xlane.xlu2 %1984 }
 0x3cf   : > { %v4616_v47 = vadd.f32 %v1985_v14, %v1782_v60  ;;  %v3292_v14 = vld [vmem:[#allocation8 + $0x134] sm:$0xf0] }
 0x3d1   : > { %2140 = vperm.xlu2 %3438, %v4616_v47  }
 0x3d4   : > { %v1935_v25 = vpop.permute.xlu0 %1934 }
 0x3de   : > { %v1793_v11 = vpop.f32.mrf.mxu2 }
 0x3df   : > { %v1808_v3 = vadd.f32 %v1807_v9, %v1793_v11  ;;  %v3291_v9 = vld [vmem:[#allocation8 + $0xf4] sm:$0xf0] }
 0x3e0   : > { %v3138_v20 = vor.u32 %v3291_v9, %v3137_v26  ;;  %v3133_v11 = vld [vmem:[#allocation8 + $0x98] sm:$0xf] }
 0x3e1   : > { %v1866_v34 = vmul.f32 %v1861_v2, %v1808_v3  ;;  %v3142_v2 = vor.u32 %v3292_v14, %v3141_v7  ;;  %v2185_v7 = vadd.s32 %v2184_v12, %v4344_v46 }
 0x3e3   : > { %v1874_v22 = vadd.f32 %v1872_v49, %v1866_v34  ;;  %2274 = vmatpush.bf16.msra.mxu2 %v3142_v2  ;;  %v3290_v49 = vld [vmem:[#allocation8 + $0xb4] sm:$0xf0]  ;;  %vm2186_vm12 = vcmp.lt.s32.totalorder %v2185_v7, 1536 }
 0x3e4   : > { %v3134_v3 = vor.u32 %v3290_v49, %v3133_v11  ;;  %v3129_v34 = vld [vmem:[#allocation8 + $0x58] sm:$0xf]  ;;  %vm3117_vm13 = vmpackc.low %vm2186_vm12, %vm2186_vm12 }
 0x3e5   : > { %1876 = vst [vmem:[%s4039_s11 + $0x20] sm:$0xff] %v1874_v22  ;;  %v3125_v22 = vld [vmem:[#allocation8 + $0x18] sm:$0xf] }
 0x3e6   : > { %v1795_v29 = vpop.f32.mrf.mxu2 }
 0x3e7   : > { %v1810_v24 = vadd.f32 %v1809_v38, %v1795_v29  ;;  %2275 = vmatpush.bf16.msra.mxu2 %v3138_v20  ;;  %v3466_v38 = vld [vmem:[#allocation11 + $0x38] sm:$0xff]  ;;  %v3467_v29 = vld [vmem:[#allocation11 + $0x30] sm:$0xff] }
 0x3e9   : > { %v1867_v50 = vmul.f32 %v1863_v48, %v1810_v24  ;;  %v3289_v48 = vld [vmem:[#allocation8 + $0x74] sm:$0xf0]  ;;  %v3468_v24 = vld [vmem:[#allocation11 + $0x28] sm:$0xff] }
 0x3ea   : > { %v3130_v31 = vor.u32 %v3289_v48, %v3129_v34  ;;  %v3189_v48 = vld [vmem:[#allocation8 + $0x11c] sm:$0xf] }
 0x3eb   : > { %v1875_v8 = vadd.f32 %v1873_v18, %v1867_v50  ;;  %2276 = vmatpush.bf16.msra.mxu2 %v3134_v3  ;;  %v3469_v50 = vld [vmem:[#allocation11 + $0x20] sm:$0xff] }
 0x3ed   : > { %1877 = vst [vmem:[%s4039_s11 + $0x60] sm:$0xff] %v1875_v8 }
 0x3ee   : > { %v1959_v59 = vpop.f32.mrf.mxu2 }
 0x3ef   : > { %v1960_v45 = vadd.f32 %v1959_v59, %v1935_v25  ;;  %2277 = vmatpush.bf16.msra.mxu2 %v3130_v31  ;;  %v3302_v31 = vld [vmem:[#allocation8 + $0x138] sm:$0xf0] }
 0x3f1   : > { %v1969_v43 = vsub.f32 %v1960_v45, %v4581_v28  ;;  %v1965_v21 = vfloor.f32 %v1960_v45 }
 0x3f3   : > { %v1971_v58 = vfloor.f32 %v1969_v43  ;;  %v1967_v40 = vsub.f32 %v1960_v45, %v1965_v21  ;;  %v3470_v45 = vld [vmem:[#allocation11 + $0x18] sm:$0xff]  ;;  %v3472_v21 = vld [vmem:[#allocation11 + $0x8] sm:$0xff] }
 0x3f5   : > { %v1973_v41 = vsub.f32 %v1969_v43, %v1971_v58  ;;  %v2013_v58 = vpop.f32.mrf.mxu0 }
 0x3f6   : > { %v1962_v55 = vpop.f32.mrf.mxu2 }
 0x3f7   : > { %v1963_v60 = vadd.f32 %v1962_v55, %v1940_v37  ;;  %v1975_v62 = vsub.f32 %v1967_v40, %v1973_v41  ;;  %v3471_v55 = vld [vmem:[#allocation11 + $0x10] sm:$0xff] }
 0x3f9   : > { %v1966_v61 = vfloor.f32 %v1963_v60  ;;  %v1970_v10 = vsub.f32 %v1963_v60, %v4601_v42 }
 0x3fb   : > { %v1972_v54 = vfloor.f32 %v1970_v10  ;;  %v1968_v28 = vsub.f32 %v1963_v60, %v1966_v61  ;;  %v2076_v60 = vld [vmem:[%s4025_s28 + $0x28] sm:$0xff] }
 0x3fd   : > { %v1974_v15 = vsub.f32 %v1970_v10, %v1972_v54  ;;  %v3473_v54 = vld [vmem:[#allocation11] sm:$0xff]  ;;  %v2015_v27 = vpop.f32.mrf.mxu0 }
 0x3fe   : > { %v4640_v36 = vpop.f32.mrf.mxu2 }
 0x3ff   : > { %v1976_v6 = vsub.f32 %v1968_v28, %v1974_v15  ;;  %v1987_v33 = vpop.xlane.xlu0 %1986 }
 0x400   : > { %v1989_v42 = vadd.f32 %v1987_v33, %v4536_v56  ;;  %v3294_v56 = vld [vmem:[#allocation6 + $0x88] sm:$0xf0]  ;;  %v2067_v37 = vpop.f32.mrf.mxu1 }
 0x401   : > { %v3070_v35 = vpack.c.bf16 %v1976_v6, %v1975_v62  ;;  %v3151_v13 = vor.u32 %v3294_v56, %v3150_v52  ;;  %v2074_v53 = vsub.f32 1.0, %v2067_v37 }
 0x402   : > { %2145 = vperm.xlu1 %3437, %v1989_v42  }
 0x403   : > { %3071 = vmatmul.msk.bf16.vlgmr.msra.gmra.mxu3 %vm3069_vm10, %v3070_v35  ;;  %3122 = vmatmul.msk.bf16.vlgmr.msra.gmra.mxu1 %vm3069_vm10, %v3070_v35  ;;  %v2078_v10 = vmul.f32 %v2076_v60, %v2074_v53 }
 0x404   : > { %2340 = vmatpush.bf16.msra.mxu3 %v3163_v32 }
 0x406   : > { %v4644_v5 = vpop.f32.mrf.mxu2 }
 0x407   : > { %2192 = vadd.xlane.f32.xlu2 %v4644_v5 }
 0x408   : > { %2341 = vmatpush.bf16.msra.mxu3 %v3159_v4  ;;  %v2069_v40 = vpop.f32.mrf.mxu1 }
 0x409   : > { %v2075_v28 = vsub.f32 1.0, %v2069_v40 }
 0x40b   : > { %v2079_v6 = vmul.f32 %v2077_v30, %v2075_v28 }
 0x40c   : > { %2342 = vmatpush.bf16.msra.mxu3 %v3155_v19 }
 0x410   : > { %2343 = vmatpush.bf16.msra.mxu3 %v3151_v13 }
 0x413   : > { %2164 = vmatmul.f32.vlgmr.msrb.gmra.mxu3 %v4640_v36 }
 0x414   : > { %2344 = vmatpush.bf16.msra.mxu3 %v3147_v63 }
 0x41b   : > { %2167 = vmatmul.f32.gmra.mxu3 %v4644_v5 }
 0x423   : > { %3164 = vmatmul.msk.bf16.vlgmr.msra.gmra.mxu3 %vm669_vm1, %v4485_v51  ;;  %v3288_v51 = vld [vmem:[#allocation8 + $0x34] sm:$0xf0] }
 0x424   : > { %v3126_v23 = vor.u32 %v3288_v51, %v3125_v22  ;;  %v3190_v22 = vor.u32 %v3302_v31, %v3189_v48  ;;  %v3185_v51 = vld [vmem:[#allocation8 + $0xdc] sm:$0xf] }
 0x426   : > { %2278 = vmatpush.bf16.msra.mxu2 %v3126_v23  ;;  %2474 = vmatpush.bf16.msrb.mxu3 %v3190_v22  ;;  %v3301_v23 = vld [vmem:[#allocation8 + $0xf8] sm:$0xf0] }
 0x427   : > { %v2490_v22 = vld [vmem:[%s4025_s28 + $0x78] sm:$0xff] }
 0x429   : > { %3143 = vmatmul.msk.bf16.vlgmr.msra.gmra.mxu2 %vm669_vm1, %v4517_v57 }
 0x42a   : > { %2417 = vmatpush.bf16.msrb.mxu2 %v3466_v38  ;;  %v3186_v38 = vor.u32 %v3301_v23, %v3185_v51 }
 0x42b   : > { %v2141_v18 = vpop.permute.xlu2 %2140 }
 0x42c   : > { %2190 = vadd.xlane.f32.xlu1 %v4640_v36  ;;  %2475 = vmatpush.bf16.msrb.mxu3 %v3186_v38 }
 0x42e   : > { %2418 = vmatpush.bf16.msrb.mxu2 %v3467_v29  ;;  %v3181_v29 = vld [vmem:[#allocation8 + $0x9c] sm:$0xf] }
 0x432   : > { %2419 = vmatpush.bf16.msrb.mxu2 %v3468_v24 }
 0x436   : > { %2420 = vmatpush.bf16.msrb.mxu2 %v3469_v50  ;;  %v3177_v50 = vld [vmem:[#allocation8 + $0x5c] sm:$0xf] }
 0x43a   : > { %2421 = vmatpush.bf16.msrb.mxu2 %v3470_v45  ;;  %v3298_v45 = vld [vmem:[#allocation8 + $0x38] sm:$0xf0] }
 0x43e   : > { %2422 = vmatpush.bf16.msrb.mxu2 %v3471_v55 }
 0x442   : > { %2423 = vmatpush.bf16.msrb.mxu2 %v3472_v21 }
 0x446   : > { %2424 = vmatpush.bf16.msrb.mxu2 %v3473_v54 }
 0x474   : > { %v2146_v39 = vpop.permute.xlu1 %2145 }
 0x47a   : > { %v2193_v8 = vpop.xlane.xlu2 %2192 }
 0x47b   : > { %v2195_v25 = vadd.f32 %v2193_v8, %v1989_v42  ;;  %v3299_v8 = vld [vmem:[#allocation8 + $0x78] sm:$0xf0] }
 0x47d   : > { %v2197_v59 = vfloor.f32 %v2195_v25  ;;  %2358 = vperm.xlu1 %3437, %v2195_v25  }
 0x47f   : > { %v2199_v43 = vsub.f32 %v2195_v25, %v2197_v59  ;;  %v3178_v25 = vor.u32 %v3299_v8, %v3177_v50  ;;  %v3173_v59 = vld [vmem:[#allocation8 + $0x1c] sm:$0xf] }
 0x480   : > { %v2226_v53 = vpop.f32.mrf.mxu1 }
 0x481   : > { %2202 = vst.msk [vmem:[#allocation2 + $0x8] sm:$0xff] %vm2200_vm11, %v2199_v43  ;;  %v3174_v43 = vor.u32 %v3298_v45, %v3173_v59 }
 0x486   : > { %v1999_v61 = vpop.f32.mrf.mxu3 }
 0x487   : > { %v2014_v0 = vadd.f32 %v2013_v58, %v1999_v61  ;;  %v2289_v58 = vld [vmem:[%s4025_s28 + $0x30] sm:$0xff] }
 0x488   : > { %v2228_v28 = vpop.f32.mrf.mxu1 }
 0x489   : > { %v2072_v41 = vmul.f32 %v2067_v37, %v2014_v0 }
 0x48b   : > { %v2080_v15 = vadd.f32 %v2078_v10, %v2072_v41 }
 0x48d   : > { %2082 = vst [vmem:[%s4039_s11 + $0x28] sm:$0xff] %v2080_v15 }
 0x48e   : > { %v2001_v62 = vpop.f32.mrf.mxu3 }
 0x48f   : > { %v2016_v33 = vadd.f32 %v2015_v27, %v2001_v62 }
 0x491   : > { %v2073_v42 = vmul.f32 %v2069_v40, %v2016_v33  ;;  %v2290_v40 = vld [vmem:[%s4025_s28 + $0x70] sm:$0xff] }
 0x493   : > { %v2081_v32 = vadd.f32 %v2079_v6, %v2073_v42 }
 0x495   : > { %2083 = vst [vmem:[%s4039_s11 + $0x68] sm:$0xff] %v2081_v32 }
 0x496   : > { %v2165_v35 = vpop.f32.mrf.mxu3 }
 0x497   : > { %v2166_v1 = vadd.f32 %v2165_v35, %v2141_v18  ;;  %v3300_v18 = vld [vmem:[#allocation8 + $0xb8] sm:$0xf0] }
 0x498   : > { %v3182_v24 = vor.u32 %v3300_v18, %v3181_v29 }
 0x499   : > { %v2175_v4 = vsub.f32 %v2166_v1, %v4640_v36  ;;  %v2171_v16 = vfloor.f32 %v2166_v1 }
 0x49a   : > { %2476 = vmatpush.bf16.msrb.mxu3 %v3182_v24 }
 0x49b   : > { %v2177_v19 = vfloor.f32 %v2175_v4  ;;  %v2173_v36 = vsub.f32 %v2166_v1, %v2171_v16  ;;  %v2397_v1 = vstv %s2396_s18 }
 0x49d   : > { %v2179_v2 = vsub.f32 %v2175_v4, %v2177_v19 }
 0x49e   : > { %v2168_v44 = vpop.f32.mrf.mxu3  ;;  %2477 = vmatpush.bf16.msrb.mxu3 %v3178_v25 }
 0x49f   : > { %v2169_v52 = vadd.f32 %v2168_v44, %v2146_v39  ;;  %v2191_v56 = vpop.xlane.xlu1 %2190  ;;  %v2181_v49 = vsub.f32 %v2173_v36, %v2179_v2 }
 0x4a0   : > { %v2194_v13 = vadd.f32 %v2191_v56, %v4616_v47  ;;  %v2398_v56 = vadd.s32 %v2397_v1, %v4344_v46 }
 0x4a1   : > { %v2172_v17 = vfloor.f32 %v2169_v52  ;;  %v2176_v63 = vsub.f32 %v2169_v52, %v4644_v5 }
 0x4a2   : > { %v2196_v14 = vfloor.f32 %v2194_v13  ;;  %2353 = vperm.xlu0 %3439, %v2194_v13   ;;  %2478 = vmatpush.bf16.msrb.mxu3 %v3174_v43  ;;  %vm2399_vm14 = vcmp.lt.s32.totalorder %v2398_v56, 1536 }
 0x4a3   : > { %v2178_v26 = vfloor.f32 %v2176_v63  ;;  %v2174_v20 = vsub.f32 %v2169_v52, %v2172_v17  ;;  %vm3165_vm15 = vmpackc.low %vm2399_vm14, %vm2399_vm14 }
 0x4a4   : > { %v2198_v9 = vsub.f32 %v2194_v13, %v2196_v14 }
 0x4a5   : > { %v2180_v11 = vsub.f32 %v2176_v63, %v2178_v26  ;;  %3191 = vmatmul.msk.bf16.vlgmr.msrb.gmra.mxu3 %vm669_vm1, %v4517_v57 }
 0x4a6   : > { %2201 = vst.msk [vmem:[#allocation2] sm:$0xff] %vm2200_vm11, %v2198_v9  ;;  %v2346_v5 = vpop.f32.mrf.mxu3 }
 0x4a7   : > { %v2182_v3 = vsub.f32 %v2174_v20, %v2180_v11  ;;  %v2489_v11 = vld [vmem:[%s4025_s28 + $0x38] sm:$0xff] }
 0x4a9   : > { %v3118_v47 = vpack.c.bf16 %v2182_v3, %v2181_v49 }
 0x4ab   : > { %3119 = vmatmul.msk.bf16.vlgmr.msra.gmra.mxu0 %vm3117_vm13, %v3118_v47  ;;  %3170 = vmatmul.msk.bf16.vlgmr.msrb.gmra.mxu2 %vm3117_vm13, %v3118_v47 }
 0x4ac   : > { %v2280_v37 = vpop.f32.mrf.mxu2 }
 0x4ad   : > { %v2287_v55 = vsub.f32 1.0, %v2280_v37 }
 0x4ae   : > { %v2348_v34 = vpop.f32.mrf.mxu3 }
 0x4af   : > { %v2291_v21 = vmul.f32 %v2289_v58, %v2287_v55 }
 0x4b4   : > { %v2282_v0 = vpop.f32.mrf.mxu2 }
 0x4b5   : > { %v2288_v41 = vsub.f32 1.0, %v2282_v0 }
 0x4b7   : > { %v2292_v30 = vmul.f32 %v2290_v40, %v2288_v41 }
 0x4bb   : > { %2377 = vmatmul.f32.vlgmr.msrb.gmra.mxu0 %v2346_v5 }
 0x4c3   : > { %2380 = vmatmul.f32.gmra.mxu0 %v2348_v34 }
 0x4ef   : > { %v2359_v35 = vpop.permute.xlu1 %2358 }
 0x514   : > { %v2354_v6 = vpop.permute.xlu0 %2353 }
 0x528   : > { %v2212_v60 = vpop.f32.mrf.mxu0  ;;  %v2480_v9 = vpop.f32.mrf.mxu3 }
 0x529   : > { %v2227_v61 = vadd.f32 %v2226_v53, %v2212_v60  ;;  %v2487_v36 = vsub.f32 1.0, %v2480_v9 }
 0x52b   : > { %v2285_v10 = vmul.f32 %v2280_v37, %v2227_v61  ;;  %v2491_v49 = vmul.f32 %v2489_v11, %v2487_v36 }
 0x52d   : > { %v2293_v54 = vadd.f32 %v2291_v21, %v2285_v10 }
 0x52e   : > { %v2426_v20 = vpop.f32.mrf.mxu2 }
 0x52f   : > { %2295 = vst [vmem:[%s4039_s11 + $0x30] sm:$0xff] %v2293_v54 }
 0x530   : > { %v2214_v15 = vpop.f32.mrf.mxu0 }
 0x531   : > { %v2229_v27 = vadd.f32 %v2228_v28, %v2214_v15 }
 0x533   : > { %v2286_v57 = vmul.f32 %v2282_v0, %v2229_v27 }
 0x535   : > { %v2294_v62 = vadd.f32 %v2292_v30, %v2286_v57 }
 0x536   : > { %v2428_v31 = vpop.f32.mrf.mxu2 }
 0x537   : > { %2296 = vst [vmem:[%s4039_s11 + $0x70] sm:$0xff] %v2294_v62 }
 0x538   : > { %v2378_v33 = vpop.f32.mrf.mxu0 }
 0x539   : > { %v2379_v42 = vadd.f32 %v2378_v33, %v2354_v6 }
 0x53b   : > { %v2388_v32 = vsub.f32 %v2379_v42, %v2346_v5  ;;  %v2384_v12 = vfloor.f32 %v2379_v42  ;;  %v2482_v5 = vpop.f32.mrf.mxu3 }
 0x53c   : > { %v2488_v48 = vsub.f32 1.0, %v2482_v5 }
 0x53d   : > { %v2390_v4 = vfloor.f32 %v2388_v32  ;;  %v2386_v17 = vsub.f32 %v2379_v42, %v2384_v12 }
 0x53e   : > { %v2492_v38 = vmul.f32 %v2490_v22, %v2488_v48 }
 0x53f   : > { %v2392_v13 = vsub.f32 %v2388_v32, %v2390_v4 }
 0x540   : > { %v2381_v39 = vpop.f32.mrf.mxu0 }
 0x541   : > { %v2382_v44 = vadd.f32 %v2381_v39, %v2359_v35  ;;  %v2394_v14 = vsub.f32 %v2386_v17, %v2392_v13 }
 0x543   : > { %v2385_v19 = vfloor.f32 %v2382_v44  ;;  %v2389_v52 = vsub.f32 %v2382_v44, %v2348_v34 }
 0x545   : > { %v2391_v16 = vfloor.f32 %v2389_v52  ;;  %v2387_v63 = vsub.f32 %v2382_v44, %v2385_v19 }
 0x547   : > { %v2393_v7 = vsub.f32 %v2389_v52, %v2391_v16 }
 0x549   : > { %v2395_v2 = vsub.f32 %v2387_v63, %v2393_v7 }
 0x54b   : > { %v3166_v26 = vpack.c.bf16 %v2395_v2, %v2394_v14 }
 0x54d   : > { %3167 = vmatmul.msk.bf16.vlgmr.msrb.gmra.mxu1 %vm3165_vm15, %v3166_v26 }
 0x5ca   : > { %v2412_v46 = vpop.f32.mrf.mxu1 }
 0x5cb   : > { %v2427_v3 = vadd.f32 %v2426_v20, %v2412_v46 }
 0x5cd   : > { %v2485_v47 = vmul.f32 %v2480_v9, %v2427_v3 }
 0x5cf   : > { %v2493_v34 = vadd.f32 %v2491_v49, %v2485_v47 }
 0x5d1   : > { %2495 = vst [vmem:[%s4039_s11 + $0x38] sm:$0xff] %v2493_v34 }
 0x5d2   : > { %v2414_v51 = vpop.f32.mrf.mxu1 }
 0x5d3   : > { %v2429_v23 = vadd.f32 %v2428_v31, %v2414_v51 }
 0x5d5   : > { %v2486_v29 = vmul.f32 %v2482_v5, %v2429_v23 }
 0x5d7   : > { %v2494_v18 = vadd.f32 %v2492_v38, %v2486_v29 }
 0x5d9   : > { %2496 = vst [vmem:[%s4039_s11 + $0x78] sm:$0xff] %v2494_v18 }
 0x5da   : > { %3711 = shalt.err (!%p3708_p9)
}
 0x5db   : > { %s3801_s21 = smov 1024   ;;  %s3802_s11 = smov 2048  }
 0x5dc   : > { %s3803_s2 = smov 64  }
 0x5dd   : > { %3328 = dma.vmem_to_hbm [thread:$0]  (%p3936_p2), %s2514_s14, 2048, %s2516_s25, %s2498_s12, %s3801_s21, %s3802_s11, %s3803_s2  }
 0x5de PF: > { %s4755_s22 = sld [smem:[#allocation22_spill]]  ;;  %p3354_p8 = pnand %p2716_p6, %p3943_p7 }
 0x5df   : > { %s4757_s18 = sld [smem:[#allocation24_spill]] }
 0x5e0   : > { %p3355_p3 = pneg %p3354_p8 }
 0x5e4   : > { %s2530_s19 = sand.u32 1, %s4755_s22  }
 0x5e5   : > { %s2531_s20 = scalar_lea.sflag [#allocation5], %s2530_s19 }
 0x5e6   : > { %3757 = dma.done.wait (%p3355_p3), %s2531_s20, 2048  }
 0x5e7   : > { %3759 = vsyncadd (%p3355_p3), %s2531_s20, 4294965248  ;;  %s28_s14 = sadd.s32 1, %s4757_s18   ;;  %s4758_s3 = sld [smem:[#allocation23_spill]] }
 0x5e8   : > { %p25_p5 = scmp.ge.s32.totalorder %s28_s14, 4   ;;  %s4759_s11 = sld [smem:[#allocation26_spill]] }
 0x5e9   : > { %s4760_s26 = sld [smem:[#allocation25_spill]]  ;;  %s4761_s30 = smov %s3766_s10 }
 0x5ea   : > { %s4763_s12 = smov %s3778_s13 }
 0x5eb   :  { %27 = sbr.rel (!%p25_p5) target bundleno = 14 (0xe), region = 142 }
 0x5ed   : > { %s4762_s10 = smov %s4758_s3 }
 0x5ef   : > { %s4764_s13 = smov %s4760_s26 }
 0x5f0   :  { %2537 = vsyncpa [#allocation4], 1 }
 0x5f1   :  { %2539 = vsyncpa [#allocation4 + $0x1], 1 }
 0x5f2   :  { %2540 = vsyncpa [#allocation7], 1 }
 0x5f3   :  { %2541 = vsyncpa [#allocation10], 1 }
 0x5f4   :  { %2542 = vsyncpa [#allocation13], 1 }
 0x5f5   :  { %2543 = vsyncpa [#allocation5], 1 }
 0x5f6   :  { %2545 = vsyncpa [#allocation5 + $0x1], 1 }

</bundles_post_ra>
